<compile_context>
chip_gen: v6e
topology: v6e:2x2x1
jax: 0.10.0
libtpu: 0.0.40
codegen_flags: <defaults>
</compile_context>

<pallas_src>
import functools

import jax
import jax.numpy as jnp
import numpy as np
from jax.experimental import pallas as pl
from jax.experimental.pallas import tpu as pltpu


# ----------------------------------------------------------------------------
# Constant 0/1 gather / scatter matrices (numpy, built once at trace time)
# ----------------------------------------------------------------------------
def _build_s2cat(N, H, W):
    """Gather matrix for Conv2d(k=3, s=2, p=1), all 9 taps lane-concatenated.
    s2cat[m_in, t*Mo + m_out] = 1 where tap t = ki*3+kj of output pixel m_out
    reads input pixel m_in (zero padding = empty column)."""
    Ho, Wo = (H - 1) // 2 + 1, (W - 1) // 2 + 1
    Mi, Mo = N * H * W, N * Ho * Wo
    S = np.zeros((Mi, 9 * Mo), np.float32)
    for ki in range(3):
        for kj in range(3):
            t = ki * 3 + kj
            for n in range(N):
                for ho in range(Ho):
                    for wo in range(Wo):
                        h, w = 2 * ho + ki - 1, 2 * wo + kj - 1
                        if 0 <= h < H and 0 <= w < W:
                            S[n * H * W + h * W + w,
                              t * Mo + n * Ho * Wo + ho * Wo + wo] = 1.0
    return S


def _build_ustk(N, H, W):
    """Row-stacked scatter matrix for ConvTranspose2d(k=2, s=2).
    ustk[t*Mi + m_in, m_out] = 1 where tap t = a*2+b of input pixel m_in writes
    output pixel (2h+a, 2w+b)."""
    Ho, Wo = 2 * H, 2 * W
    Mi, Mo = N * H * W, N * Ho * Wo
    U = np.zeros((4 * Mi, Mo), np.float32)
    for a in range(2):
        for b in range(2):
            t = a * 2 + b
            for n in range(N):
                for h in range(H):
                    for w in range(W):
                        U[t * Mi + n * H * W + h * W + w,
                          n * Ho * Wo + (2 * h + a) * Wo + (2 * w + b)] = 1.0
    return U


def _im2col_T_k3_s2_p1(x):
    """x: [N, C, H, W] -> patches^T [C*9, N*Ho*Wo]; row index = c*9 + ki*3 + kj
    (matches OIHW weight flatten).  Boundary prep on the raw input only."""
    N, C, H, W = x.shape
    Ho, Wo = (H - 1) // 2 + 1, (W - 1) // 2 + 1
    xp = jnp.pad(x, ((0, 0), (0, 0), (1, 1), (1, 1)))
    taps = []
    for ki in range(3):
        for kj in range(3):
            taps.append(xp[:, :, ki:ki + 2 * Ho:2, kj:kj + 2 * Wo:2])  # [N,C,Ho,Wo]
    pat = jnp.stack(taps, axis=2)                   # [N, C, 9, Ho, Wo]
    pat = jnp.transpose(pat, (1, 2, 0, 3, 4))       # [C, 9, N, Ho, Wo]
    return pat.reshape(C * 9, N * Ho * Wo)


# ----------------------------------------------------------------------------
# Fused Pallas kernel: whole forward pass, intermediates stay on-chip
# ----------------------------------------------------------------------------
def _fused_ae_kernel(p1_ref, w1_ref, b1_ref,
                     w2_ref, s2cat_ref, b2_ref,
                     wd1_ref, u1stk_ref, bd1_ref,
                     wd2_ref, u2stk_ref, bd2_ref,
                     enc_ref, dec_ref,
                     d1cat_ref, d2cat_ref):
    dot = functools.partial(jnp.dot, preferred_element_type=jnp.float32)
    M2 = enc_ref.shape[1]

    # encoder conv1: Conv2d(3, 8, 3, 2, 1) as one lane-dense GEMM -> a1 [8, M1]
    a1 = dot(w1_ref[...], p1_ref[...]) + b1_ref[...]

    # encoder conv2: Conv2d(8, 16, 3, 2, 1)
    #   one wide 0/1 gather GEMM over all 9 taps (bf16 gather is exact) ...
    gcat = dot(a1.astype(jnp.bfloat16), s2cat_ref[...])            # [8, 9*M2] f32
    #   ... then 9 tiny independent weight GEMMs, summed as a balanced tree.
    parts = [dot(w2_ref[t], gcat[:, t * M2:(t + 1) * M2]) for t in range(9)]
    while len(parts) > 1:
        nxt = [parts[i] + parts[i + 1] for i in range(0, len(parts) - 1, 2)]
        if len(parts) % 2:
            nxt.append(parts[-1])
        parts = nxt
    enc = parts[0] + b2_ref[...]                                    # [16, M2]
    enc_ref[...] = enc

    # decoder convT1: ConvTranspose2d(16, 8, 2, 2)
    #   4 independent weight GEMMs written lane-concatenated into scratch,
    #   then ONE 0/1 scatter GEMM against the row-stacked scatter matrix.
    for t in range(4):
        d1cat_ref[:, t * M2:(t + 1) * M2] = dot(wd1_ref[t], enc)
    d1 = dot(d1cat_ref[...].astype(jnp.bfloat16), u1stk_ref[...]) + bd1_ref[...]  # [8, Md1]

    # decoder convT2 + tanh: ConvTranspose2d(8, 3, 2, 2) (Cout padded 3 -> 8 rows)
    Md1 = d1.shape[1]
    for t in range(4):
        d2cat_ref[:, t * Md1:(t + 1) * Md1] = dot(wd2_ref[t], d1)
    dec_ref[...] = jnp.tanh(
        dot(d2cat_ref[...].astype(jnp.bfloat16), u2stk_ref[...]) + bd2_ref[...])  # [8, M0]


def autoencoder_forward(x, params):
    N, C, H, W = x.shape
    assert C == 3
    H1, W1 = (H - 1) // 2 + 1, (W - 1) // 2 + 1      # after conv1
    H2, W2 = (H1 - 1) // 2 + 1, (W1 - 1) // 2 + 1    # after conv2 (encoded)
    M1, M2 = N * H1 * W1, N * H2 * W2
    Md1 = N * (2 * H2) * (2 * W2)                    # after dec1
    M0 = N * (4 * H2) * (4 * W2)                     # after dec2

    # ---- boundary prep (tiny, one-time, pre-kernel) ----
    # TODO(synk): move conv1's im2col into the kernel at real resolutions.
    Kp = 32                                          # pad K: 27 -> 32
    p1 = jnp.pad(_im2col_T_k3_s2_p1(x), ((0, Kp - 27), (0, 0)))            # [32, M1]
    w1 = jnp.pad(params["enc1_w"].reshape(8, 27), ((0, 0), (0, Kp - 27)))  # [8, 32]
    b1 = params["enc1_b"].reshape(8, 1)

    w2 = jnp.transpose(params["enc2_w"], (2, 3, 0, 1)).reshape(9, 16, 8)   # taps [Cout,Cin]
    b2 = params["enc2_b"].reshape(16, 1)

    wd1 = jnp.transpose(params["dec1_w"], (2, 3, 1, 0)).reshape(4, 8, 16)  # taps [Cout,Cin]
    bd1 = params["dec1_b"].reshape(8, 1)

    wd2 = jnp.transpose(params["dec2_w"], (2, 3, 1, 0)).reshape(4, 3, 8)
    wd2 = jnp.pad(wd2, ((0, 0), (0, 5), (0, 0)))                           # Cout 3 -> 8
    bd2 = jnp.pad(params["dec2_b"].reshape(3, 1), ((0, 5), (0, 0)))

    # 0/1 selection matrices in bf16 (exact; half the VMEM/DMA, native MXU rate).
    # NOTE: keep bf16 (not int8) so the same path is fast on v5e/v6e/v7x.
    # TODO(synk): O(M^2) constants -- replace with strided gather/scatter + pixel grid
    # before scaling resolution.
    s2cat = jnp.asarray(_build_s2cat(N, H1, W1), dtype=jnp.bfloat16)        # [M1, 9*M2]
    u1stk = jnp.asarray(_build_ustk(N, H2, W2), dtype=jnp.bfloat16)         # [4*M2, Md1]
    u2stk = jnp.asarray(_build_ustk(N, 2 * H2, 2 * W2), dtype=jnp.bfloat16) # [4*Md1, M0]

    vmem = lambda: pl.BlockSpec(memory_space=pltpu.MemorySpace.VMEM)
    enc_mat, dec_mat = pl.pallas_call(
        _fused_ae_kernel,
        out_shape=(jax.ShapeDtypeStruct((16, M2), jnp.float32),
                   jax.ShapeDtypeStruct((8, M0), jnp.float32)),
        in_specs=[vmem() for _ in range(12)],
        out_specs=(vmem(), vmem()),
        scratch_shapes=[pltpu.VMEM((8, 4 * M2), jnp.float32),
                        pltpu.VMEM((8, 4 * Md1), jnp.float32)],
    )(p1, w1, b1, w2, s2cat, b2, wd1, u1stk, bd1, wd2, u2stk, bd2)

    # boundary transposes back to NCHW; drop the padded decoder rows 3:8
    encoded = jnp.transpose(enc_mat.reshape(16, N, H2, W2), (1, 0, 2, 3))
    decoded = jnp.transpose(dec_mat[:3].reshape(3, N, 4 * H2, 4 * W2), (1, 0, 2, 3))
    return encoded, decoded


# ----------------------------------------------------------------------------
# Pure-JAX reference (HIGHEST precision, for correctness check)
# ----------------------------------------------------------------------------
def _ref_conv(x, w, b, stride, pad):
    y = jax.lax.conv_general_dilated(
        x, w, window_strides=(stride, stride),
        padding=((pad, pad), (pad, pad)),
        dimension_numbers=("NCHW", "OIHW", "NCHW"),
        precision=jax.lax.Precision.HIGHEST)
    return y + b[None, :, None, None]


def _ref_convT_k2_s2(x, w, b):
    # transposed conv == conv with lhs_dilation=stride, padding=k-1, flipped kernel
    w_eq = jnp.transpose(jnp.flip(w, axis=(2, 3)), (1, 0, 2, 3))   # -> OIHW
    y = jax.lax.conv_general_dilated(
        x, w_eq, window_strides=(1, 1),
        padding=((1, 1), (1, 1)), lhs_dilation=(2, 2),
        dimension_numbers=("NCHW", "OIHW", "NCHW"),
        precision=jax.lax.Precision.HIGHEST)
    return y + b[None, :, None, None]


def reference_forward(x, p):
    e1 = _ref_conv(x, p["enc1_w"], p["enc1_b"], 2, 1)
    enc = _ref_conv(e1, p["enc2_w"], p["enc2_b"], 2, 1)
    d1 = _ref_convT_k2_s2(enc, p["dec1_w"], p["dec1_b"])
    dec = jnp.tanh(_ref_convT_k2_s2(d1, p["dec2_w"], p["dec2_b"]))
    return enc, dec


# ----------------------------------------------------------------------------
# Main
# ----------------------------------------------------------------------------
if __name__ == "__main__":
    key = jax.random.PRNGKey(0)
    k_in, k_p = jax.random.split(key)
    kp = jax.random.split(k_p, 8)

    # input: NCHW, batch=2, 3 channels, 16x16 spatial
    x = jax.random.normal(k_in, (2, 3, 16, 16), dtype=jnp.float32)

    # deterministic parameters (shapes follow PyTorch conventions)
    params = {
        "enc1_w": 0.1 * jax.random.normal(kp[0], (8, 3, 3, 3), jnp.float32),    # Conv2d(3,8,3,2,1)
        "enc1_b": 0.1 * jax.random.normal(kp[1], (8,), jnp.float32),
        "enc2_w": 0.1 * jax.random.normal(kp[2], (16, 8, 3, 3), jnp.float32),   # Conv2d(8,16,3,2,1)
        "enc2_b": 0.1 * jax.random.normal(kp[3], (16,), jnp.float32),
        "dec1_w": 0.1 * jax.random.normal(kp[4], (16, 8, 2, 2), jnp.float32),   # ConvT(16,8,2,2)
        "dec1_b": 0.1 * jax.random.normal(kp[5], (8,), jnp.float32),
        "dec2_w": 0.1 * jax.random.normal(kp[6], (8, 3, 2, 2), jnp.float32),    # ConvT(8,3,2,2)
        "dec2_b": 0.1 * jax.random.normal(kp[7], (3,), jnp.float32),
    }

    fwd = jax.jit(autoencoder_forward)
    encoded, decoded = jax.block_until_ready(fwd(x, params))
    assert encoded.shape == (2, 16, 4, 4), encoded.shape
    assert decoded.shape == (2, 3, 16, 16), decoded.shape

    enc_ref, dec_ref = jax.block_until_ready(reference_forward(x, params))
    # Tolerance covers default (bf16-pass) MXU precision of the in-kernel GEMMs
    # vs the HIGHEST-precision reference (0/1 gather/scatter dots are exact).
    np.testing.assert_allclose(np.asarray(encoded), np.asarray(enc_ref),
                               rtol=2e-2, atol=2e-2)
    np.testing.assert_allclose(np.asarray(decoded), np.asarray(dec_ref),
                               rtol=2e-2, atol=2e-2)

    print("KERNEL_OK")
</pallas_src>

<mosaic_0001>
module attributes {stable_mosaic.version = 11 : i64} {
  func.func @_fused_ae_kernel(%arg0: memref<32x128xf32, #tpu.memory_space<vmem>>, %arg1: memref<8x32xf32, #tpu.memory_space<vmem>>, %arg2: memref<8x1xf32, #tpu.memory_space<vmem>>, %arg3: memref<9x16x8xf32, #tpu.memory_space<vmem>>, %arg4: memref<128x288xbf16, #tpu.memory_space<vmem>>, %arg5: memref<16x1xf32, #tpu.memory_space<vmem>>, %arg6: memref<4x8x16xf32, #tpu.memory_space<vmem>>, %arg7: memref<128x128xbf16, #tpu.memory_space<vmem>>, %arg8: memref<8x1xf32, #tpu.memory_space<vmem>>, %arg9: memref<4x8x8xf32, #tpu.memory_space<vmem>>, %arg10: memref<512x512xbf16, #tpu.memory_space<vmem>>, %arg11: memref<8x1xf32, #tpu.memory_space<vmem>>, %arg12: memref<16x32xf32, #tpu.memory_space<vmem>>, %arg13: memref<8x512xf32, #tpu.memory_space<vmem>>, %arg14: memref<8x128xf32, #tpu.memory_space<vmem>>, %arg15: memref<8x512xf32, #tpu.memory_space<vmem>>) attributes {dimension_semantics = [], scalar_prefetch = 0 : i64, scratch_operands = 2 : i64, tpu.core_type = #tpu.core_type<tc>} {
    %c0 = arith.constant 0 : index
    %c0_0 = arith.constant 0 : index
    %0 = vector.load %arg1[%c0, %c0_0] : memref<8x32xf32, #tpu.memory_space<vmem>>, vector<8x32xf32>
    %c0_1 = arith.constant 0 : index
    %c0_2 = arith.constant 0 : index
    %1 = vector.load %arg0[%c0_1, %c0_2] : memref<32x128xf32, #tpu.memory_space<vmem>>, vector<32x128xf32>
    %cst = arith.constant dense<0.000000e+00> : vector<8x128xf32>
    %2 = tpu.matmul %0, %1, %cst {dimension_numbers = #tpu.dot_dimension_numbers<[1], [0], [0], [1], [0, 0, 1, 1], [], []>} : vector<8x32xf32>, vector<32x128xf32>, vector<8x128xf32> -> vector<8x128xf32>
    %c0_3 = arith.constant 0 : index
    %c0_4 = arith.constant 0 : index
    %3 = vector.load %arg2[%c0_3, %c0_4] : memref<8x1xf32, #tpu.memory_space<vmem>>, vector<8x1xf32>
    %4 = vector.broadcast %3 : vector<8x1xf32> to vector<8x128xf32>
    %5 = arith.addf %2, %4 : vector<8x128xf32>
    %6 = arith.truncf %5 : vector<8x128xf32> to vector<8x128xbf16>
    %c0_5 = arith.constant 0 : index
    %c0_6 = arith.constant 0 : index
    %7 = vector.load %arg4[%c0_5, %c0_6] : memref<128x288xbf16, #tpu.memory_space<vmem>>, vector<128x288xbf16>
    %cst_7 = arith.constant dense<0.000000e+00> : vector<8x288xf32>
    %8 = tpu.matmul %6, %7, %cst_7 {dimension_numbers = #tpu.dot_dimension_numbers<[1], [0], [0], [1], [0, 0, 1, 1], [], []>} : vector<8x128xbf16>, vector<128x288xbf16>, vector<8x288xf32> -> vector<8x288xf32>
    %c0_8 = arith.constant 0 : index
    %c0_9 = arith.constant 0 : index
    %c0_10 = arith.constant 0 : index
    %9 = vector.load %arg3[%c0_8, %c0_9, %c0_10] : memref<9x16x8xf32, #tpu.memory_space<vmem>>, vector<1x16x8xf32>
    %10 = vector.shape_cast %9 : vector<1x16x8xf32> to vector<16x8xf32>
    %11 = vector.extract_strided_slice %8 {offsets = [0, 0], sizes = [8, 32], strides = [1, 1]} : vector<8x288xf32> to vector<8x32xf32>
    %cst_11 = arith.constant dense<0.000000e+00> : vector<16x32xf32>
    %12 = tpu.matmul %10, %11, %cst_11 {dimension_numbers = #tpu.dot_dimension_numbers<[1], [0], [0], [1], [0, 0, 1, 1], [], []>} : vector<16x8xf32>, vector<8x32xf32>, vector<16x32xf32> -> vector<16x32xf32>
    %c1 = arith.constant 1 : index
    %c0_12 = arith.constant 0 : index
    %c0_13 = arith.constant 0 : index
    %13 = vector.load %arg3[%c1, %c0_12, %c0_13] : memref<9x16x8xf32, #tpu.memory_space<vmem>>, vector<1x16x8xf32>
    %14 = vector.shape_cast %13 : vector<1x16x8xf32> to vector<16x8xf32>
    %15 = vector.extract_strided_slice %8 {offsets = [0, 32], sizes = [8, 32], strides = [1, 1]} : vector<8x288xf32> to vector<8x32xf32>
    %cst_14 = arith.constant dense<0.000000e+00> : vector<16x32xf32>
    %16 = tpu.matmul %14, %15, %cst_14 {dimension_numbers = #tpu.dot_dimension_numbers<[1], [0], [0], [1], [0, 0, 1, 1], [], []>} : vector<16x8xf32>, vector<8x32xf32>, vector<16x32xf32> -> vector<16x32xf32>
    %c2 = arith.constant 2 : index
    %c0_15 = arith.constant 0 : index
    %c0_16 = arith.constant 0 : index
    %17 = vector.load %arg3[%c2, %c0_15, %c0_16] : memref<9x16x8xf32, #tpu.memory_space<vmem>>, vector<1x16x8xf32>
    %18 = vector.shape_cast %17 : vector<1x16x8xf32> to vector<16x8xf32>
    %19 = vector.extract_strided_slice %8 {offsets = [0, 64], sizes = [8, 32], strides = [1, 1]} : vector<8x288xf32> to vector<8x32xf32>
    %cst_17 = arith.constant dense<0.000000e+00> : vector<16x32xf32>
    %20 = tpu.matmul %18, %19, %cst_17 {dimension_numbers = #tpu.dot_dimension_numbers<[1], [0], [0], [1], [0, 0, 1, 1], [], []>} : vector<16x8xf32>, vector<8x32xf32>, vector<16x32xf32> -> vector<16x32xf32>
    %c3 = arith.constant 3 : index
    %c0_18 = arith.constant 0 : index
    %c0_19 = arith.constant 0 : index
    %21 = vector.load %arg3[%c3, %c0_18, %c0_19] : memref<9x16x8xf32, #tpu.memory_space<vmem>>, vector<1x16x8xf32>
    %22 = vector.shape_cast %21 : vector<1x16x8xf32> to vector<16x8xf32>
    %23 = vector.extract_strided_slice %8 {offsets = [0, 96], sizes = [8, 32], strides = [1, 1]} : vector<8x288xf32> to vector<8x32xf32>
    %cst_20 = arith.constant dense<0.000000e+00> : vector<16x32xf32>
    %24 = tpu.matmul %22, %23, %cst_20 {dimension_numbers = #tpu.dot_dimension_numbers<[1], [0], [0], [1], [0, 0, 1, 1], [], []>} : vector<16x8xf32>, vector<8x32xf32>, vector<16x32xf32> -> vector<16x32xf32>
    %c4 = arith.constant 4 : index
    %c0_21 = arith.constant 0 : index
    %c0_22 = arith.constant 0 : index
    %25 = vector.load %arg3[%c4, %c0_21, %c0_22] : memref<9x16x8xf32, #tpu.memory_space<vmem>>, vector<1x16x8xf32>
    %26 = vector.shape_cast %25 : vector<1x16x8xf32> to vector<16x8xf32>
    %27 = vector.extract_strided_slice %8 {offsets = [0, 128], sizes = [8, 32], strides = [1, 1]} : vector<8x288xf32> to vector<8x32xf32>
    %cst_23 = arith.constant dense<0.000000e+00> : vector<16x32xf32>
    %28 = tpu.matmul %26, %27, %cst_23 {dimension_numbers = #tpu.dot_dimension_numbers<[1], [0], [0], [1], [0, 0, 1, 1], [], []>} : vector<16x8xf32>, vector<8x32xf32>, vector<16x32xf32> -> vector<16x32xf32>
    %c5 = arith.constant 5 : index
    %c0_24 = arith.constant 0 : index
    %c0_25 = arith.constant 0 : index
    %29 = vector.load %arg3[%c5, %c0_24, %c0_25] : memref<9x16x8xf32, #tpu.memory_space<vmem>>, vector<1x16x8xf32>
    %30 = vector.shape_cast %29 : vector<1x16x8xf32> to vector<16x8xf32>
    %31 = vector.extract_strided_slice %8 {offsets = [0, 160], sizes = [8, 32], strides = [1, 1]} : vector<8x288xf32> to vector<8x32xf32>
    %cst_26 = arith.constant dense<0.000000e+00> : vector<16x32xf32>
    %32 = tpu.matmul %30, %31, %cst_26 {dimension_numbers = #tpu.dot_dimension_numbers<[1], [0], [0], [1], [0, 0, 1, 1], [], []>} : vector<16x8xf32>, vector<8x32xf32>, vector<16x32xf32> -> vector<16x32xf32>
    %c6 = arith.constant 6 : index
    %c0_27 = arith.constant 0 : index
    %c0_28 = arith.constant 0 : index
    %33 = vector.load %arg3[%c6, %c0_27, %c0_28] : memref<9x16x8xf32, #tpu.memory_space<vmem>>, vector<1x16x8xf32>
    %34 = vector.shape_cast %33 : vector<1x16x8xf32> to vector<16x8xf32>
    %35 = vector.extract_strided_slice %8 {offsets = [0, 192], sizes = [8, 32], strides = [1, 1]} : vector<8x288xf32> to vector<8x32xf32>
    %cst_29 = arith.constant dense<0.000000e+00> : vector<16x32xf32>
    %36 = tpu.matmul %34, %35, %cst_29 {dimension_numbers = #tpu.dot_dimension_numbers<[1], [0], [0], [1], [0, 0, 1, 1], [], []>} : vector<16x8xf32>, vector<8x32xf32>, vector<16x32xf32> -> vector<16x32xf32>
    %c7 = arith.constant 7 : index
    %c0_30 = arith.constant 0 : index
    %c0_31 = arith.constant 0 : index
    %37 = vector.load %arg3[%c7, %c0_30, %c0_31] : memref<9x16x8xf32, #tpu.memory_space<vmem>>, vector<1x16x8xf32>
    %38 = vector.shape_cast %37 : vector<1x16x8xf32> to vector<16x8xf32>
    %39 = vector.extract_strided_slice %8 {offsets = [0, 224], sizes = [8, 32], strides = [1, 1]} : vector<8x288xf32> to vector<8x32xf32>
    %cst_32 = arith.constant dense<0.000000e+00> : vector<16x32xf32>
    %40 = tpu.matmul %38, %39, %cst_32 {dimension_numbers = #tpu.dot_dimension_numbers<[1], [0], [0], [1], [0, 0, 1, 1], [], []>} : vector<16x8xf32>, vector<8x32xf32>, vector<16x32xf32> -> vector<16x32xf32>
    %c8 = arith.constant 8 : index
    %c0_33 = arith.constant 0 : index
    %c0_34 = arith.constant 0 : index
    %41 = vector.load %arg3[%c8, %c0_33, %c0_34] : memref<9x16x8xf32, #tpu.memory_space<vmem>>, vector<1x16x8xf32>
    %42 = vector.shape_cast %41 : vector<1x16x8xf32> to vector<16x8xf32>
    %43 = vector.extract_strided_slice %8 {offsets = [0, 256], sizes = [8, 32], strides = [1, 1]} : vector<8x288xf32> to vector<8x32xf32>
    %cst_35 = arith.constant dense<0.000000e+00> : vector<16x32xf32>
    %44 = tpu.matmul %42, %43, %cst_35 {dimension_numbers = #tpu.dot_dimension_numbers<[1], [0], [0], [1], [0, 0, 1, 1], [], []>} : vector<16x8xf32>, vector<8x32xf32>, vector<16x32xf32> -> vector<16x32xf32>
    %45 = arith.addf %12, %16 : vector<16x32xf32>
    %46 = arith.addf %20, %24 : vector<16x32xf32>
    %47 = arith.addf %28, %32 : vector<16x32xf32>
    %48 = arith.addf %36, %40 : vector<16x32xf32>
    %49 = arith.addf %45, %46 : vector<16x32xf32>
    %50 = arith.addf %47, %48 : vector<16x32xf32>
    %51 = arith.addf %49, %50 : vector<16x32xf32>
    %52 = arith.addf %51, %44 : vector<16x32xf32>
    %c0_36 = arith.constant 0 : index
    %c0_37 = arith.constant 0 : index
    %53 = vector.load %arg5[%c0_36, %c0_37] : memref<16x1xf32, #tpu.memory_space<vmem>>, vector<16x1xf32>
    %54 = vector.broadcast %53 : vector<16x1xf32> to vector<16x32xf32>
    %55 = arith.addf %52, %54 : vector<16x32xf32>
    %c0_38 = arith.constant 0 : index
    %c0_39 = arith.constant 0 : index
    %56 = vector.load %arg12[%c0_38, %c0_39] : memref<16x32xf32, #tpu.memory_space<vmem>>, vector<16x32xf32>
    tpu.vector_store %arg12[%c0_38, %c0_39], %55 {strides = array<i32>} : memref<16x32xf32, #tpu.memory_space<vmem>>, vector<16x32xf32>,
    %c0_40 = arith.constant 0 : index
    %c0_41 = arith.constant 0 : index
    %c0_42 = arith.constant 0 : index
    %57 = vector.load %arg6[%c0_40, %c0_41, %c0_42] : memref<4x8x16xf32, #tpu.memory_space<vmem>>, vector<1x8x16xf32>
    %58 = vector.shape_cast %57 : vector<1x8x16xf32> to vector<8x16xf32>
    %cst_43 = arith.constant dense<0.000000e+00> : vector<8x32xf32>
    %59 = tpu.matmul %58, %55, %cst_43 {dimension_numbers = #tpu.dot_dimension_numbers<[1], [0], [0], [1], [0, 0, 1, 1], [], []>} : vector<8x16xf32>, vector<16x32xf32>, vector<8x32xf32> -> vector<8x32xf32>
    %c0_44 = arith.constant 0 : index
    %c0_45 = arith.constant 0 : index
    %60 = vector.load %arg14[%c0_44, %c0_45] : memref<8x128xf32, #tpu.memory_space<vmem>>, vector<8x32xf32>
    tpu.vector_store %arg14[%c0_44, %c0_45], %59 {strides = array<i32>} : memref<8x128xf32, #tpu.memory_space<vmem>>, vector<8x32xf32>,
    %c1_46 = arith.constant 1 : index
    %c0_47 = arith.constant 0 : index
    %c0_48 = arith.constant 0 : index
    %61 = vector.load %arg6[%c1_46, %c0_47, %c0_48] : memref<4x8x16xf32, #tpu.memory_space<vmem>>, vector<1x8x16xf32>
    %62 = vector.shape_cast %61 : vector<1x8x16xf32> to vector<8x16xf32>
    %cst_49 = arith.constant dense<0.000000e+00> : vector<8x32xf32>
    %63 = tpu.matmul %62, %55, %cst_49 {dimension_numbers = #tpu.dot_dimension_numbers<[1], [0], [0], [1], [0, 0, 1, 1], [], []>} : vector<8x16xf32>, vector<16x32xf32>, vector<8x32xf32> -> vector<8x32xf32>
    %c0_50 = arith.constant 0 : index
    %c32 = arith.constant 32 : index
    %64 = vector.load %arg14[%c0_50, %c32] : memref<8x128xf32, #tpu.memory_space<vmem>>, vector<8x32xf32>
    tpu.vector_store %arg14[%c0_50, %c32], %63 {strides = array<i32>} : memref<8x128xf32, #tpu.memory_space<vmem>>, vector<8x32xf32>,
    %c2_51 = arith.constant 2 : index
    %c0_52 = arith.constant 0 : index
    %c0_53 = arith.constant 0 : index
    %65 = vector.load %arg6[%c2_51, %c0_52, %c0_53] : memref<4x8x16xf32, #tpu.memory_space<vmem>>, vector<1x8x16xf32>
    %66 = vector.shape_cast %65 : vector<1x8x16xf32> to vector<8x16xf32>
    %cst_54 = arith.constant dense<0.000000e+00> : vector<8x32xf32>
    %67 = tpu.matmul %66, %55, %cst_54 {dimension_numbers = #tpu.dot_dimension_numbers<[1], [0], [0], [1], [0, 0, 1, 1], [], []>} : vector<8x16xf32>, vector<16x32xf32>, vector<8x32xf32> -> vector<8x32xf32>
    %c0_55 = arith.constant 0 : index
    %c64 = arith.constant 64 : index
    %68 = vector.load %arg14[%c0_55, %c64] : memref<8x128xf32, #tpu.memory_space<vmem>>, vector<8x32xf32>
    tpu.vector_store %arg14[%c0_55, %c64], %67 {strides = array<i32>} : memref<8x128xf32, #tpu.memory_space<vmem>>, vector<8x32xf32>,
    %c3_56 = arith.constant 3 : index
    %c0_57 = arith.constant 0 : index
    %c0_58 = arith.constant 0 : index
    %69 = vector.load %arg6[%c3_56, %c0_57, %c0_58] : memref<4x8x16xf32, #tpu.memory_space<vmem>>, vector<1x8x16xf32>
    %70 = vector.shape_cast %69 : vector<1x8x16xf32> to vector<8x16xf32>
    %cst_59 = arith.constant dense<0.000000e+00> : vector<8x32xf32>
    %71 = tpu.matmul %70, %55, %cst_59 {dimension_numbers = #tpu.dot_dimension_numbers<[1], [0], [0], [1], [0, 0, 1, 1], [], []>} : vector<8x16xf32>, vector<16x32xf32>, vector<8x32xf32> -> vector<8x32xf32>
    %c0_60 = arith.constant 0 : index
    %c96 = arith.constant 96 : index
    %72 = vector.load %arg14[%c0_60, %c96] : memref<8x128xf32, #tpu.memory_space<vmem>>, vector<8x32xf32>
    tpu.vector_store %arg14[%c0_60, %c96], %71 {strides = array<i32>} : memref<8x128xf32, #tpu.memory_space<vmem>>, vector<8x32xf32>,
    %c0_61 = arith.constant 0 : index
    %c0_62 = arith.constant 0 : index
    %73 = vector.load %arg14[%c0_61, %c0_62] : memref<8x128xf32, #tpu.memory_space<vmem>>, vector<8x128xf32>
    %74 = arith.truncf %73 : vector<8x128xf32> to vector<8x128xbf16>
    %c0_63 = arith.constant 0 : index
    %c0_64 = arith.constant 0 : index
    %75 = vector.load %arg7[%c0_63, %c0_64] : memref<128x128xbf16, #tpu.memory_space<vmem>>, vector<128x128xbf16>
    %cst_65 = arith.constant dense<0.000000e+00> : vector<8x128xf32>
    %76 = tpu.matmul %74, %75, %cst_65 {dimension_numbers = #tpu.dot_dimension_numbers<[1], [0], [0], [1], [0, 0, 1, 1], [], []>} : vector<8x128xbf16>, vector<128x128xbf16>, vector<8x128xf32> -> vector<8x128xf32>
    %c0_66 = arith.constant 0 : index
    %c0_67 = arith.constant 0 : index
    %77 = vector.load %arg8[%c0_66, %c0_67] : memref<8x1xf32, #tpu.memory_space<vmem>>, vector<8x1xf32>
    %78 = vector.broadcast %77 : vector<8x1xf32> to vector<8x128xf32>
    %79 = arith.addf %76, %78 : vector<8x128xf32>
    %c0_68 = arith.constant 0 : index
    %c0_69 = arith.constant 0 : index
    %c0_70 = arith.constant 0 : index
    %80 = vector.load %arg9[%c0_68, %c0_69, %c0_70] : memref<4x8x8xf32, #tpu.memory_space<vmem>>, vector<1x8x8xf32>
    %81 = vector.shape_cast %80 : vector<1x8x8xf32> to vector<8x8xf32>
    %cst_71 = arith.constant dense<0.000000e+00> : vector<8x128xf32>
    %82 = tpu.matmul %81, %79, %cst_71 {dimension_numbers = #tpu.dot_dimension_numbers<[1], [0], [0], [1], [0, 0, 1, 1], [], []>} : vector<8x8xf32>, vector<8x128xf32>, vector<8x128xf32> -> vector<8x128xf32>
    %c0_72 = arith.constant 0 : index
    %c0_73 = arith.constant 0 : index
    %83 = vector.load %arg15[%c0_72, %c0_73] : memref<8x512xf32, #tpu.memory_space<vmem>>, vector<8x128xf32>
    tpu.vector_store %arg15[%c0_72, %c0_73], %82 {strides = array<i32>} : memref<8x512xf32, #tpu.memory_space<vmem>>, vector<8x128xf32>,
    %c1_74 = arith.constant 1 : index
    %c0_75 = arith.constant 0 : index
    %c0_76 = arith.constant 0 : index
    %84 = vector.load %arg9[%c1_74, %c0_75, %c0_76] : memref<4x8x8xf32, #tpu.memory_space<vmem>>, vector<1x8x8xf32>
    %85 = vector.shape_cast %84 : vector<1x8x8xf32> to vector<8x8xf32>
    %cst_77 = arith.constant dense<0.000000e+00> : vector<8x128xf32>
    %86 = tpu.matmul %85, %79, %cst_77 {dimension_numbers = #tpu.dot_dimension_numbers<[1], [0], [0], [1], [0, 0, 1, 1], [], []>} : vector<8x8xf32>, vector<8x128xf32>, vector<8x128xf32> -> vector<8x128xf32>
    %c0_78 = arith.constant 0 : index
    %c128 = arith.constant 128 : index
    %87 = vector.load %arg15[%c0_78, %c128] : memref<8x512xf32, #tpu.memory_space<vmem>>, vector<8x128xf32>
    tpu.vector_store %arg15[%c0_78, %c128], %86 {strides = array<i32>} : memref<8x512xf32, #tpu.memory_space<vmem>>, vector<8x128xf32>,
    %c2_79 = arith.constant 2 : index
    %c0_80 = arith.constant 0 : index
    %c0_81 = arith.constant 0 : index
    %88 = vector.load %arg9[%c2_79, %c0_80, %c0_81] : memref<4x8x8xf32, #tpu.memory_space<vmem>>, vector<1x8x8xf32>
    %89 = vector.shape_cast %88 : vector<1x8x8xf32> to vector<8x8xf32>
    %cst_82 = arith.constant dense<0.000000e+00> : vector<8x128xf32>
    %90 = tpu.matmul %89, %79, %cst_82 {dimension_numbers = #tpu.dot_dimension_numbers<[1], [0], [0], [1], [0, 0, 1, 1], [], []>} : vector<8x8xf32>, vector<8x128xf32>, vector<8x128xf32> -> vector<8x128xf32>
    %c0_83 = arith.constant 0 : index
    %c256 = arith.constant 256 : index
    %91 = vector.load %arg15[%c0_83, %c256] : memref<8x512xf32, #tpu.memory_space<vmem>>, vector<8x128xf32>
    tpu.vector_store %arg15[%c0_83, %c256], %90 {strides = array<i32>} : memref<8x512xf32, #tpu.memory_space<vmem>>, vector<8x128xf32>,
    %c3_84 = arith.constant 3 : index
    %c0_85 = arith.constant 0 : index
    %c0_86 = arith.constant 0 : index
    %92 = vector.load %arg9[%c3_84, %c0_85, %c0_86] : memref<4x8x8xf32, #tpu.memory_space<vmem>>, vector<1x8x8xf32>
    %93 = vector.shape_cast %92 : vector<1x8x8xf32> to vector<8x8xf32>
    %cst_87 = arith.constant dense<0.000000e+00> : vector<8x128xf32>
    %94 = tpu.matmul %93, %79, %cst_87 {dimension_numbers = #tpu.dot_dimension_numbers<[1], [0], [0], [1], [0, 0, 1, 1], [], []>} : vector<8x8xf32>, vector<8x128xf32>, vector<8x128xf32> -> vector<8x128xf32>
    %c0_88 = arith.constant 0 : index
    %c384 = arith.constant 384 : index
    %95 = vector.load %arg15[%c0_88, %c384] : memref<8x512xf32, #tpu.memory_space<vmem>>, vector<8x128xf32>
    tpu.vector_store %arg15[%c0_88, %c384], %94 {strides = array<i32>} : memref<8x512xf32, #tpu.memory_space<vmem>>, vector<8x128xf32>,
    %c0_89 = arith.constant 0 : index
    %c0_90 = arith.constant 0 : index
    %96 = vector.load %arg15[%c0_89, %c0_90] : memref<8x512xf32, #tpu.memory_space<vmem>>, vector<8x512xf32>
    %97 = arith.truncf %96 : vector<8x512xf32> to vector<8x512xbf16>
    %c0_91 = arith.constant 0 : index
    %c0_92 = arith.constant 0 : index
    %98 = vector.load %arg10[%c0_91, %c0_92] : memref<512x512xbf16, #tpu.memory_space<vmem>>, vector<512x512xbf16>
    %cst_93 = arith.constant dense<0.000000e+00> : vector<8x512xf32>
    %99 = tpu.matmul %97, %98, %cst_93 {dimension_numbers = #tpu.dot_dimension_numbers<[1], [0], [0], [1], [0, 0, 1, 1], [], []>} : vector<8x512xbf16>, vector<512x512xbf16>, vector<8x512xf32> -> vector<8x512xf32>
    %c0_94 = arith.constant 0 : index
    %c0_95 = arith.constant 0 : index
    %100 = vector.load %arg11[%c0_94, %c0_95] : memref<8x1xf32, #tpu.memory_space<vmem>>, vector<8x1xf32>
    %101 = vector.broadcast %100 : vector<8x1xf32> to vector<8x512xf32>
    %102 = arith.addf %99, %101 : vector<8x512xf32>
    %103 = math.tanh %102 : vector<8x512xf32>
    %c0_96 = arith.constant 0 : index
    %c0_97 = arith.constant 0 : index
    %104 = vector.load %arg13[%c0_96, %c0_97] : memref<8x512xf32, #tpu.memory_space<vmem>>, vector<8x512xf32>
    tpu.vector_store %arg13[%c0_96, %c0_97], %103 {strides = array<i32>} : memref<8x512xf32, #tpu.memory_space<vmem>>, vector<8x512xf32>,
    return
  }
}

</mosaic_0001>

<bundles_post_ra>
// kernel: autoencoder_forward.1
= control target key start
LH: loop header
LB: loop body
LE: loop exit
PB: predicated region body
PF: predicated region fallthrough
CT: control target
= control target key end

     0   :  { %v3538_v0 = vmov 0.0   ;;  %vm3539_vm0 = vmmov 0   ;;  %v3540_v4 = vmov 0   ;;  %vm55_vm1 = vcmask 261120   ;;  %s3542_s29 = smov 96   ;;  %s3543_s30 = smov 64   ;;  %s4321_s0 = inlined_call_operand.vmem [shape: f32[32,128], index: 0, kind: input, shape index: {}]   ;;  %s4322_s2 = inlined_call_operand.vmem [shape: f32[8,1], index: 2, kind: input, shape index: {}]   ;;  %s4323_s4 = inlined_call_operand.vmem [shape: bf16[128,288], index: 4, kind: input, shape index: {}]   ;;  %s4324_s1 = inlined_call_operand.vmem [shape: f32[8,32], index: 1, kind: input, shape index: {}]   ;;  %s4325_s3 = inlined_call_operand.vmem [shape: f32[9,16,8], index: 3, kind: input, shape index: {}]   ;;  %s4326_s5 = inlined_call_operand.vmem [shape: f32[16,1], index: 5, kind: input, shape index: {}]   ;;  %s4327_s12 = inlined_call_operand.vmem [shape: f32[16,32], index: 12, kind: output, shape index: {0}]   ;;  %s4328_s6 = inlined_call_operand.vmem [shape: f32[4,8,16], index: 6, kind: input, shape index: {}]   ;;  %s4329_s7 = inlined_call_operand.vmem [shape: bf16[128,128], index: 7, kind: input, shape index: {}]   ;;  %s4330_s11 = inlined_call_operand.vmem [shape: f32[8,1], index: 11, kind: input, shape index: {}]   ;;  %s4331_s8 = inlined_call_operand.vmem [shape: f32[8,1], index: 8, kind: input, shape index: {}]   ;;  %s4332_s10 = inlined_call_operand.vmem [shape: bf16[512,512], index: 10, kind: input, shape index: {}]   ;;  %s4333_s9 = inlined_call_operand.vmem [shape: f32[4,8,8], index: 9, kind: input, shape index: {}]   ;;  %s4334_s13 = inlined_call_operand.vmem [shape: f32[8,512], index: 13, kind: output, shape index: {1}]  }
   0x1   :  { %3146 = vmatprep.subr.mxu0 %v3538_v0  ;;  %v48_v1 = vld [vmem:[%s4321_s0 + $0x18] sm:$0xff]  ;;  %v47_v2 = vld [vmem:[%s4321_s0 + $0x10] sm:$0xff]  ;;  %3154 = vmatprep.mubr.msk.f32.mxu0 %vm3539_vm0, %v3538_v0  ;;  %v46_v3 = vld [vmem:[%s4321_s0 + $0x8] sm:$0xff]  ;;  %vm380_vm2 = vcmask 64512   ;;  %vm1172_vm3 = vcmask 130048   ;;  %vm1326_vm4 = vcmask 523520  }
   0x2   :  { %3147 = vmatpush3.msra.mxu0 %v48_v1  ;;  %3296 = vset.pattern.permute.xlu0 %v3540_v4  ;;  %v49_v5 = vld [vmem:[%s4322_s2] sm:$0xff]  ;;  %v3298_v7 = vld [vmem:[%s4323_s4 + $0xac] ss:$12 sps:$4 sm:$0xff]   ;;  %v3300_v9 = vld [vmem:[%s4323_s4 + $0xa8] ss:$12 sps:$4 sm:$0xff]   ;;  %vm1407_vm5 = vcmask 785920  }
   0x3   :  { %3148 = vmatprep.subr.mxu0 %v3538_v0  ;;  %v45_v6 = vld [vmem:[%s4321_s0] sm:$0xff]  ;;  %52 = vperm.xlu0 %3296, %v49_v5   ;;  %v3301_v10 = vld [vmem:[%s4323_s4 + $0xb0] ss:$12 sps:$4 sm:$0xff]   ;;  %v3314_v19 = vld [vmem:[%s4323_s4 + $0x4c] ss:$12 sps:$4 sm:$0xff]   ;;  %vm1488_vm6 = vcmask 1048320  }
   0x4   :  { %3149 = vmatpush3.msra.mxu0 %v47_v2  ;;  %v44_v8 = vld [vmem:[%s4324_s1] sm:$0xff]  ;;  %322 = vmatprep.mubr.bf16.mxu1 %v3540_v4  ;;  %v3304_v12 = vld [vmem:[%s4323_s4 + $0x90] ss:$12 sps:$4 sm:$0xff]   ;;  %v3313_v20 = vld [vmem:[%s4323_s4 + $0x68] ss:$12 sps:$4 sm:$0xff]  }
   0x5   :  { %3150 = vmatprep.subr.mxu0 %v3538_v0  ;;  %290 = vmatprep.subr.bf16.mxu1 %v3298_v7  ;;  %v3302_v11 = vld [vmem:[%s4323_s4 + $0x94] ss:$12 sps:$4 sm:$0xff]   ;;  %v3306_v13 = vld [vmem:[%s4323_s4 + $0x7c] ss:$12 sps:$4 sm:$0xff]   ;;  %v3305_v14 = vld [vmem:[%s4323_s4 + $0x98] ss:$12 sps:$4 sm:$0xff]  }
   0x6   :  { %3151 = vmatpush3.msra.mxu0 %v46_v3  ;;  %291 = vmatpush1.bf16.msra.mxu1 %v3300_v9  ;;  %v3308_v15 = vld [vmem:[%s4323_s4 + $0x78] ss:$12 sps:$4 sm:$0xff]   ;;  %v3309_v17 = vld [vmem:[%s4323_s4 + $0x80] ss:$12 sps:$4 sm:$0xff]   ;;  %v3316_v21 = vld [vmem:[%s4323_s4 + $0x48] ss:$12 sps:$4 sm:$0xff]  }
   0x7   :  { %3152 = vmatprep.subr.mxu0 %v3538_v0  ;;  %3297 = vset.pattern.permute.xlu1 %v3540_v4  ;;  %v3310_v16 = vld [vmem:[%s4323_s4 + $0x64] ss:$12 sps:$4 sm:$0xff]   ;;  %v3312_v18 = vld [vmem:[%s4323_s4 + $0x60] ss:$12 sps:$4 sm:$0xff]   ;;  %v3322_v25 = vld [vmem:[%s4323_s4 + $0x1c] ss:$12 sps:$4 sm:$0xff]  }
   0x8   :  { %3153 = vmatpush3.msra.mxu0 %v45_v6  ;;  %292 = vmatprep.subr.bf16.mxu1 %v3302_v11  ;;  %v3318_v22 = vld [vmem:[%s4323_s4 + $0x34] ss:$12 sps:$4 sm:$0xff]   ;;  %v3317_v23 = vld [vmem:[%s4323_s4 + $0x50] ss:$12 sps:$4 sm:$0xff]   ;;  %v3321_v26 = vld [vmem:[%s4323_s4 + $0x38] ss:$12 sps:$4 sm:$0xff]  }
   0x9   :  { %3155 = vmatmul.mubr.msk.f32.vlgmr.msra.gmra.mxu0 %vm55_vm1, %v44_v8  ;;  %3157 = vmatprep.subr.bf16.mxu0 %v3538_v0  ;;  %v3320_v24 = vld [vmem:[%s4323_s4 + $0x30] ss:$12 sps:$4 sm:$0xff]   ;;  %v3324_v27 = vld [vmem:[%s4323_s4 + $0x18] ss:$12 sps:$4 sm:$0xff]   ;;  %v3325_v28 = vld [vmem:[%s4323_s4 + $0x20] ss:$12 sps:$4 sm:$0xff]  }
   0xa   :  { %3158 = vmatpush3.bf16.msra.mxu0 %v3301_v10  ;;  %293 = vmatpush1.bf16.msra.mxu1 %v3304_v12  ;;  %v3326_v29 = vld [vmem:[%s4323_s4 + $0x4] ss:$12 sps:$4 sm:$0xff]   ;;  %v3328_v30 = vld [vmem:[%s4323_s4] ss:$12 sps:$4 sm:$0xff]   ;;  %v3329_v31 = vld [vmem:[%s4323_s4 + $0x8] ss:$12 sps:$4 sm:$0xff]  }
   0xb   :  { %3159 = vmatprep.subr.bf16.mxu0 %v3538_v0  ;;  %294 = vmatprep.subr.bf16.mxu1 %v3306_v13  ;;  %v2892_v37 = vld [vmem:[%s4325_s3 + $0x10] sm:$0xff]  ;;  %s3541_s4 = smov 32   ;;  %v1155_v47 = vld [vmem:[%s4326_s5] sm:$0xff]  ;;  %v1156_v48 = vld [vmem:[%s4326_s5 + $0x8] sm:$0xff] }
   0xc   :  { %3173 = vmatprep.mubr.msk.bf16.mxu0 %vm3539_vm0, %v3538_v0  ;;  %v2898_v38 = vld [vmem:[%s4325_s3 + $0x30] sm:$0xff]  ;;  %v2893_v51 = vld [vmem:[%s4325_s3 + $0x18] sm:$0xff]  ;;  %v2914_v60 = vld [vmem:[%s4325_s3 + $0x80] sm:$0xff] }
   0xd   :  { %v2899_v52 = vld [vmem:[%s4325_s3 + $0x38] sm:$0xff]  ;;  %v2904_v53 = vld [vmem:[%s4325_s3 + $0x50] sm:$0xff]  ;;  %v371_v61 = vld [vmem:[%s4325_s3] sm:$0xff] }
   0xe   :  { %3160 = vmatpush3.bf16.msra.mxu0 %v3305_v14  ;;  %295 = vmatpush1.bf16.msra.mxu1 %v3308_v15  ;;  %v2910_v54 = vld [vmem:[%s4325_s3 + $0x70] sm:$0xff]  ;;  %v2905_v57 = vld [vmem:[%s4325_s3 + $0x58] sm:$0xff]  ;;  %v2915_v62 = vld [vmem:[%s4325_s3 + $0x88] sm:$0xff] }
   0xf   :  { %3161 = vmatprep.subr.bf16.mxu0 %v3538_v0  ;;  %296 = vmatprep.subr.bf16.mxu1 %v3310_v16  ;;  %v2911_v58 = vld [vmem:[%s4325_s3 + $0x78] sm:$0xff]  ;;  %v372_v63 = vld [vmem:[%s4325_s3 + $0x8] sm:$0xff]  ;;  %v2896_v1 = vld [vmem:[%s4325_s3 + $0x20] sm:$0xff] }
  0x10   :  { %v2902_v2 = vld [vmem:[%s4325_s3 + $0x40] sm:$0xff]  ;;  %v2897_v4 = vld [vmem:[%s4325_s3 + $0x28] sm:$0xff] }
  0x11   :  { %v2903_v5 = vld [vmem:[%s4325_s3 + $0x48] sm:$0xff]  ;;  %v2908_v6 = vld [vmem:[%s4325_s3 + $0x60] sm:$0xff] }
  0x12   :  { %3162 = vmatpush3.bf16.msra.mxu0 %v3309_v17  ;;  %297 = vmatpush1.bf16.msra.mxu1 %v3312_v18  ;;  %v2909_v7 = vld [vmem:[%s4325_s3 + $0x68] sm:$0xff] }
  0x13   :  { %3163 = vmatprep.subr.bf16.mxu0 %v3538_v0  ;;  %298 = vmatprep.subr.bf16.mxu1 %v3314_v19 }
  0x16   :  { %3164 = vmatpush3.bf16.msra.mxu0 %v3313_v20  ;;  %299 = vmatpush1.bf16.msra.mxu1 %v3316_v21 }
  0x17   :  { %3165 = vmatprep.subr.bf16.mxu0 %v3538_v0  ;;  %300 = vmatprep.subr.bf16.mxu1 %v3318_v22 }
  0x1a   :  { %3166 = vmatpush3.bf16.msra.mxu0 %v3317_v23  ;;  %301 = vmatpush1.bf16.msra.mxu1 %v3320_v24 }
  0x1b   :  { %3167 = vmatprep.subr.bf16.mxu0 %v3538_v0  ;;  %302 = vmatprep.subr.bf16.mxu1 %v3322_v25 }
  0x1e   :  { %3168 = vmatpush3.bf16.msra.mxu0 %v3321_v26  ;;  %303 = vmatpush1.bf16.msra.mxu1 %v3324_v27 }
  0x1f   :  { %3169 = vmatprep.subr.bf16.mxu0 %v3538_v0  ;;  %304 = vmatprep.subr.bf16.mxu1 %v3326_v29 }
  0x22   :  { %3170 = vmatpush3.bf16.msra.mxu0 %v3325_v28  ;;  %305 = vmatpush1.bf16.msra.mxu1 %v3328_v30 }
  0x23   :  { %3171 = vmatprep.subr.bf16.mxu0 %v3538_v0 }
  0x26   :  { %3172 = vmatpush3.bf16.msra.mxu0 %v3329_v31 }
  0x7e   :  { %v53_v32 = vpop.permute.xlu0 %52 }
  0xc9   :  { %v125_v33 = vpop.f32.mrf.mxu0 }
  0xca   :  { %v126_v34 = vadd.f32 %v125_v33, %v53_v32 }
  0xcb   :  { %v3156_v35 = vpop.f32.mrf.mxu0 }
  0xcc   :  { %v129_v36 = vpack.c.bf16 %v126_v34, %v126_v34 }
  0xce   :  { %323 = vmatmul.mubr.bf16.vlgmr.msra.gmra.mxu1 %v129_v36  ;;  %3174 = vmatmul.mubr.bf16.vlgmr.msra.gmra.mxu0 %v129_v36 }
  0xcf   :  { %3179 = vmatprep.mubr.msk.f32.mxu0 %vm380_vm2, %v2892_v37  ;;  %3184 = vmatprep.mubr.msk.f32.mxu1 %vm380_vm2, %v2898_v38 }
 0x18e   :  { %v324_v39 = vpop.f32.mrf.mxu1  ;;  %v365_v40 = vpop.f32.mrf.mxu0 }
 0x18f   :  { %468 = vrot.lane.b32.xlu1 %v324_v39, %s3541_s4  ;;  %377 = vrot.lane.b32.xlu0 %v324_v39, %s3542_s29 }
 0x190   :  { %v326_v41 = vpop.f32.mrf.mxu1  ;;  %v3175_v42 = vpop.f32.mrf.mxu0 }
 0x192   :  { %v328_v43 = vpop.f32.mrf.mxu1  ;;  %v368_v44 = vpop.f32.mrf.mxu0 }
 0x193   :  { %649 = vrot.lane.b32.xlu0 %v326_v41, %s3541_s4  ;;  %559 = vrot.lane.b32.xlu1 %v326_v41, %s3542_s29 }
 0x194   :  { %v329_v45 = vpop.f32.mrf.mxu1  ;;  %v3176_v46 = vpop.f32.mrf.mxu0 }
 0x195   :  { %v1171_v46 = vld [vmem:[%s4328_s6] sm:$0xff] }
 0x197   :  { %1063 = vrot.lane.b32.xlu0 %v326_v41, %s3543_s30  ;;  %898 = vrot.lane.b32.xlu1 %v324_v39, %s3543_s30 }
 0x19b   :  { %1159 = vperm.xlu0 %3296, %v1155_v47   ;;  %1164 = vperm.xlu1 %3297, %v1156_v48   ;;  %v2927_v47 = vld [vmem:[%s4328_s6 + $0x8] sm:$0xff]  ;;  %v2929_v48 = vld [vmem:[%s4328_s6 + $0x10] sm:$0xff] }
 0x201   :  { %v469_v49 = vpop.permute.xlu1 %468  ;;  %v378_v50 = vpop.permute.xlu0 %377 }
 0x202   :  { %3177 = vmatprep.subr.mxu0 %v378_v50  ;;  %3182 = vmatprep.subr.mxu1 %v469_v49 }
 0x203   :  { %3178 = vmatpush3.msra.mxu0 %v378_v50  ;;  %3183 = vmatpush3.msra.mxu1 %v469_v49  ;;  %v2931_v49 = vld [vmem:[%s4328_s6 + $0x18] sm:$0xff] }
 0x204   :  { %3180 = vmatmul.mubr.msk.f32.vlgmr.msra.gmra.mxu0 %vm380_vm2, %v2893_v51  ;;  %3185 = vmatmul.mubr.msk.f32.vlgmr.msra.gmra.mxu1 %vm380_vm2, %v2899_v52  ;;  %v3330_v50 = vld [vmem:[%s4329_s7 + $0x38] sm:$0xff]   ;;  %v3331_v51 = vld [vmem:[%s4329_s7 + $0x30] sm:$0xff]   ;;  %v3332_v52 = vld [vmem:[%s4329_s7 + $0x28] sm:$0xff]  }
 0x205   :  { %v650_v55 = vpop.permute.xlu0 %649  ;;  %v560_v56 = vpop.permute.xlu1 %559  ;;  %3189 = vmatprep.mubr.msk.f32.mxu0 %vm380_vm2, %v2904_v53  ;;  %3194 = vmatprep.mubr.msk.f32.mxu1 %vm380_vm2, %v2910_v54  ;;  %v3333_v53 = vld [vmem:[%s4329_s7 + $0x20] sm:$0xff]   ;;  %v3334_v54 = vld [vmem:[%s4329_s7 + $0x18] sm:$0xff]  }
 0x206   :  { %3187 = vmatprep.subr.mxu0 %v560_v56  ;;  %3192 = vmatprep.subr.mxu1 %v650_v55 }
 0x207   :  { %3188 = vmatpush3.msra.mxu0 %v560_v56  ;;  %3193 = vmatpush3.msra.mxu1 %v650_v55  ;;  %v3335_v55 = vld [vmem:[%s4329_s7 + $0x10] sm:$0xff]   ;;  %v3336_v56 = vld [vmem:[%s4329_s7 + $0x8] sm:$0xff]  }
 0x208   :  { %3190 = vmatmul.mubr.msk.f32.vlgmr.msra.gmra.mxu0 %vm380_vm2, %v2905_v57  ;;  %3195 = vmatmul.mubr.msk.f32.vlgmr.msra.gmra.mxu1 %vm380_vm2, %v2911_v58  ;;  %v3337_v57 = vld [vmem:[%s4329_s7] sm:$0xff]  }
 0x209   :  { %3197 = vmatprep.subr.mxu0 %v365_v40  ;;  %3202 = vmatprep.subr.mxu1 %v324_v39  ;;  %v899_v59 = vpop.permute.xlu1 %898  ;;  %v1064_v3 = vpop.permute.xlu0 %1063 }
 0x20a   :  { %3203 = vmatpush3.msra.mxu1 %v324_v39  ;;  %3198 = vmatpush3.msra.mxu0 %v365_v40 }
 0x20b   :  { %3207 = vmatprep.subr.mxu0 %v899_v59  ;;  %3212 = vmatprep.subr.mxu1 %v326_v41 }
 0x20c   :  { %3199 = vmatprep.mubr.msk.f32.mxu0 %vm380_vm2, %v2914_v60  ;;  %3204 = vmatprep.mubr.msk.f32.mxu1 %vm380_vm2, %v371_v61 }
 0x20d   :  { %3200 = vmatmul.mubr.msk.f32.vlgmr.msra.gmra.mxu0 %vm380_vm2, %v2915_v62  ;;  %3205 = vmatmul.mubr.msk.f32.vlgmr.msra.gmra.mxu1 %vm380_vm2, %v372_v63 }
 0x20e   :  { %3208 = vmatpush3.msra.mxu0 %v899_v59  ;;  %3213 = vmatpush3.msra.mxu1 %v326_v41 }
 0x20f   :  { %3217 = vmatprep.subr.mxu0 %v1064_v3  ;;  %3209 = vmatprep.mubr.msk.f32.mxu0 %vm380_vm2, %v2896_v1 }
 0x210   :  { %3214 = vmatprep.mubr.msk.f32.mxu1 %vm380_vm2, %v2902_v2  ;;  %3222 = vmatprep.subr.mxu1 %v3538_v0  ;;  %v2041_v2 = vld [vmem:[%s4330_s11] sm:$0xff] }
 0x211   :  { %3210 = vmatmul.mubr.msk.f32.vlgmr.msra.gmra.mxu0 %vm380_vm2, %v2897_v4  ;;  %3215 = vmatmul.mubr.msk.f32.vlgmr.msra.gmra.mxu1 %vm380_vm2, %v2903_v5  ;;  %v1508_v4 = vld [vmem:[%s4331_s8] sm:$0xff] }
 0x212   :  { %3218 = vmatpush3.msra.mxu0 %v1064_v3  ;;  %3219 = vmatprep.mubr.msk.f32.mxu0 %vm380_vm2, %v2908_v6 }
 0x213   :  { %3229 = vmatprep.subr.mxu0 %v3538_v0  ;;  %3226 = vmatprep.mubr.msk.f32.mxu1 %vm3539_vm0, %v3538_v0 }
 0x215   :  { %3220 = vmatmul.mubr.msk.f32.vlgmr.msra.gmra.mxu0 %vm380_vm2, %v2909_v7 }
 0x216   :  { %3233 = vmatprep.mubr.msk.f32.mxu0 %vm3539_vm0, %v3538_v0  ;;  %v1165_v39 = vpop.permute.xlu1 %1164  ;;  %v1160_v44 = vpop.permute.xlu0 %1159 }
 0x2c4   :  { %v3181_v8 = vpop.f32.mrf.mxu0  ;;  %v3186_v9 = vpop.f32.mrf.mxu1 }
 0x2c6   :  { %v453_v10 = vpop.f32.mrf.mxu0  ;;  %v543_v11 = vpop.f32.mrf.mxu1 }
 0x2c8   :  { %v3191_v12 = vpop.f32.mrf.mxu0  ;;  %v3196_v13 = vpop.f32.mrf.mxu1 }
 0x2ca   :  { %v634_v14 = vpop.f32.mrf.mxu0  ;;  %v724_v15 = vpop.f32.mrf.mxu1 }
 0x2cd   :  { %v3201_v16 = vpop.f32.mrf.mxu0  ;;  %v3206_v17 = vpop.f32.mrf.mxu1 }
 0x2ce   :  { %v895_v26 = vadd.f32 %v3206_v17, %v3181_v8  ;;  %v3367_v17 = vld [vmem:[%s4332_s10 + $0x284] ss:$16 sps:$4 sm:$0xff]  }
 0x2cf   :  { %v808_v18 = vpop.f32.mrf.mxu0  ;;  %v889_v19 = vpop.f32.mrf.mxu1 }
 0x2d0   :  { %v890_v30 = vadd.f32 %v889_v19, %v453_v10  ;;  %v3347_v10 = vld [vmem:[%s4332_s10 + $0x2e0] ss:$16 sps:$4 sm:$0xff]   ;;  %v3373_v19 = vld [vmem:[%s4332_s10 + $0x264] ss:$16 sps:$4 sm:$0xff]  }
 0x2d1   :  { %v3211_v20 = vpop.f32.mrf.mxu0  ;;  %v3216_v21 = vpop.f32.mrf.mxu1 }
 0x2d2   :  { %v979_v23 = vadd.f32 %v3211_v20, %v3186_v9  ;;  %v1060_v27 = vadd.f32 %v3216_v21, %v3191_v12  ;;  %v3353_v12 = vld [vmem:[%s4332_s10 + $0x2c0] ss:$16 sps:$4 sm:$0xff]   ;;  %v3379_v21 = vld [vmem:[%s4332_s10 + $0x244] ss:$16 sps:$4 sm:$0xff]  }
 0x2d3   :  { %v973_v22 = vpop.f32.mrf.mxu0  ;;  %v1054_v24 = vpop.f32.mrf.mxu1  ;;  %v3377_v20 = vld [vmem:[%s4332_s10 + $0x240] ss:$16 sps:$4 sm:$0xff]  }
 0x2d4   :  { %v974_v28 = vadd.f32 %v973_v22, %v543_v11  ;;  %v1148_v32 = vadd.f32 %v979_v23, %v895_v26  ;;  %v1055_v33 = vadd.f32 %v1054_v24, %v634_v14  ;;  %v3349_v11 = vld [vmem:[%s4332_s10 + $0x2e4] ss:$16 sps:$4 sm:$0xff]   ;;  %v3359_v14 = vld [vmem:[%s4332_s10 + $0x2a0] ss:$16 sps:$4 sm:$0xff]  }
 0x2d5   :  { %v3221_v25 = vpop.f32.mrf.mxu0  ;;  %v3383_v22 = vld [vmem:[%s4332_s10 + $0x220] ss:$16 sps:$4 sm:$0xff]   ;;  %v3385_v23 = vld [vmem:[%s4332_s10 + $0x224] ss:$16 sps:$4 sm:$0xff]  }
 0x2d6   :  { %v1144_v29 = vadd.f32 %v3221_v25, %v3196_v13  ;;  %v1147_v36 = vadd.f32 %v974_v28, %v890_v30  ;;  %v3355_v13 = vld [vmem:[%s4332_s10 + $0x2c4] ss:$16 sps:$4 sm:$0xff]   ;;  %v3389_v24 = vld [vmem:[%s4332_s10 + $0x200] ss:$16 sps:$4 sm:$0xff]  }
 0x2d7   :  { %v1138_v31 = vpop.f32.mrf.mxu0  ;;  %v3391_v25 = vld [vmem:[%s4332_s10 + $0x204] ss:$16 sps:$4 sm:$0xff]   ;;  %v3395_v26 = vld [vmem:[%s4332_s10 + $0x3e0] ss:$16 sps:$4 sm:$0xff]  }
 0x2d8   :  { %v1150_v34 = vadd.f32 %v1144_v29, %v1060_v27  ;;  %v1139_v35 = vadd.f32 %v1138_v31, %v724_v15  ;;  %v3361_v15 = vld [vmem:[%s4332_s10 + $0x2a4] ss:$16 sps:$4 sm:$0xff]   ;;  %v3401_v28 = vld [vmem:[%s4332_s10 + $0x3c0] ss:$16 sps:$4 sm:$0xff]  }
 0x2d9   :  { %v3397_v27 = vld [vmem:[%s4332_s10 + $0x3e4] ss:$16 sps:$4 sm:$0xff]   ;;  %v3407_v30 = vld [vmem:[%s4332_s10 + $0x3a0] ss:$16 sps:$4 sm:$0xff]  }
 0x2da   :  { %v1149_v37 = vadd.f32 %v1139_v35, %v1055_v33  ;;  %v1152_v38 = vadd.f32 %v1150_v34, %v1148_v32  ;;  %v3403_v29 = vld [vmem:[%s4332_s10 + $0x3c4] ss:$16 sps:$4 sm:$0xff]   ;;  %v3413_v32 = vld [vmem:[%s4332_s10 + $0x380] ss:$16 sps:$4 sm:$0xff]  }
 0x2db   :  { %v3409_v31 = vld [vmem:[%s4332_s10 + $0x3a4] ss:$16 sps:$4 sm:$0xff]   ;;  %v3419_v34 = vld [vmem:[%s4332_s10 + $0x360] ss:$16 sps:$4 sm:$0xff]  }
 0x2dc   :  { %v1151_v40 = vadd.f32 %v1149_v37, %v1147_v36  ;;  %v1154_v41 = vadd.f32 %v3201_v16, %v1152_v38  ;;  %v3365_v16 = vld [vmem:[%s4332_s10 + $0x280] ss:$16 sps:$4 sm:$0xff]   ;;  %v3415_v33 = vld [vmem:[%s4332_s10 + $0x384] ss:$16 sps:$4 sm:$0xff]  }
 0x2dd   :  { %v3421_v35 = vld [vmem:[%s4332_s10 + $0x364] ss:$16 sps:$4 sm:$0xff]  }
 0x2de   :  { %v1153_v42 = vadd.f32 %v1151_v40, %v808_v18  ;;  %v1168_v43 = vadd.f32 %v1165_v39, %v1154_v41  ;;  %v3371_v18 = vld [vmem:[%s4332_s10 + $0x260] ss:$16 sps:$4 sm:$0xff]  }
 0x2df   :  { %v1602_v39 = vld [vmem:[%s4333_s9] sm:$0xff] }
 0x2e0   :  { %v1167_v45 = vadd.f32 %v1160_v44, %v1153_v42  ;;  %1170 = vst.msk [vmem:[%s4327_s12 + $0x8] sm:$0xff] %vm55_vm1, %v1168_v43  ;;  %3223 = vmatpush3.msra.mxu1 %v1168_v43  ;;  %3230 = vmatpush3.msra.mxu0 %v1168_v43  ;;  %v2942_v42 = vld [vmem:[%s4333_s9 + $0x8] sm:$0xff]  ;;  %v2944_v44 = vld [vmem:[%s4333_s9 + $0x10] sm:$0xff] }
 0x2e1   :  { %3224 = vmatprep.subr.mxu1 %v3538_v0  ;;  %3231 = vmatprep.subr.mxu0 %v3538_v0 }
 0x2e2   :  { %1169 = vst.msk [vmem:[%s4327_s12] sm:$0xff] %vm55_vm1, %v1167_v45  ;;  %3225 = vmatpush3.msra.mxu1 %v1167_v45  ;;  %3232 = vmatpush3.msra.mxu0 %v1167_v45 }
 0x2e3   :  { %3227 = vmatmul.mubr.msk.f32.vlgmr.msra.gmra.mxu1 %vm1172_vm3, %v1171_v46  ;;  %3234 = vmatmul.mubr.msk.f32.vlgmr.msra.gmra.mxu0 %vm1172_vm3, %v2927_v47  ;;  %v2946_v46 = vld [vmem:[%s4333_s9 + $0x18] sm:$0xff]  ;;  %v3338_v47 = vld [vmem:[%s4332_s10 + $0xe0] ss:$16 sps:$4 sm:$0xff]  }
 0x2e4   :  { %3236 = vmatprep.subr.mxu1 %v3538_v0  ;;  %3243 = vmatprep.subr.mxu0 %v3538_v0 }
 0x2e5   :  { %3237 = vmatpush3.msra.mxu1 %v1168_v43  ;;  %3244 = vmatpush3.msra.mxu0 %v1168_v43 }
 0x2e6   :  { %3238 = vmatprep.subr.mxu1 %v3538_v0  ;;  %3245 = vmatprep.subr.mxu0 %v3538_v0 }
 0x2e7   :  { %3239 = vmatpush3.msra.mxu1 %v1167_v45  ;;  %3240 = vmatprep.mubr.msk.f32.mxu1 %vm3539_vm0, %v3538_v0 }
 0x2e8   :  { %3246 = vmatpush3.msra.mxu0 %v1167_v45  ;;  %3247 = vmatprep.mubr.msk.f32.mxu0 %vm3539_vm0, %v3538_v0  ;;  %v3340_v45 = vld [vmem:[%s4332_s10 + $0xe4] ss:$16 sps:$4 sm:$0xff]  }
 0x2e9   :  { %3241 = vmatmul.mubr.msk.f32.vlgmr.msra.gmra.mxu1 %vm1172_vm3, %v2929_v48  ;;  %3248 = vmatmul.mubr.msk.f32.vlgmr.msra.gmra.mxu0 %vm1172_vm3, %v2931_v49  ;;  %v3343_v48 = vld [vmem:[%s4332_s10 + $0xc4] ss:$16 sps:$4 sm:$0xff]  }
 0x2ea   :  { %3250 = vmatprep.subr.bf16.mxu1 %v3538_v0  ;;  %3266 = vmatprep.mubr.msk.bf16.mxu1 %vm3539_vm0, %v3538_v0  ;;  %v3346_v49 = vld [vmem:[%s4332_s10 + $0xa4] ss:$16 sps:$4 sm:$0xff]  }
 0x2eb   :  { %3270 = vmatprep.subr.mxu0 %v3538_v0  ;;  %3272 = vmatprep.mubr.msk.f32.mxu0 %vm3539_vm0, %v3538_v0 }
 0x2ec   :  { %3251 = vmatpush3.bf16.msra.mxu1 %v3330_v50  ;;  %v3344_v50 = vld [vmem:[%s4332_s10 + $0xa0] ss:$16 sps:$4 sm:$0xff]  }
 0x2ed   :  { %3252 = vmatprep.subr.bf16.mxu1 %v3538_v0 }
 0x2f0   :  { %3253 = vmatpush3.bf16.msra.mxu1 %v3331_v51  ;;  %v3352_v51 = vld [vmem:[%s4332_s10 + $0x84] ss:$16 sps:$4 sm:$0xff]  }
 0x2f1   :  { %3254 = vmatprep.subr.bf16.mxu1 %v3538_v0 }
 0x2f4   :  { %3255 = vmatpush3.bf16.msra.mxu1 %v3332_v52  ;;  %v3350_v52 = vld [vmem:[%s4332_s10 + $0x80] ss:$16 sps:$4 sm:$0xff]  }
 0x2f5   :  { %3256 = vmatprep.subr.bf16.mxu1 %v3538_v0 }
 0x2f8   :  { %3257 = vmatpush3.bf16.msra.mxu1 %v3333_v53  ;;  %v3358_v53 = vld [vmem:[%s4332_s10 + $0x64] ss:$16 sps:$4 sm:$0xff]  }
 0x2f9   :  { %3258 = vmatprep.subr.bf16.mxu1 %v3538_v0 }
 0x2fc   :  { %3259 = vmatpush3.bf16.msra.mxu1 %v3334_v54  ;;  %v3356_v54 = vld [vmem:[%s4332_s10 + $0x60] ss:$16 sps:$4 sm:$0xff]  }
 0x2fd   :  { %3260 = vmatprep.subr.bf16.mxu1 %v3538_v0 }
 0x300   :  { %3261 = vmatpush3.bf16.msra.mxu1 %v3335_v55  ;;  %v3364_v55 = vld [vmem:[%s4332_s10 + $0x44] ss:$16 sps:$4 sm:$0xff]  }
 0x301   :  { %3262 = vmatprep.subr.bf16.mxu1 %v3538_v0 }
 0x304   :  { %3263 = vmatpush3.bf16.msra.mxu1 %v3336_v56  ;;  %v3362_v56 = vld [vmem:[%s4332_s10 + $0x40] ss:$16 sps:$4 sm:$0xff]  }
 0x305   :  { %3264 = vmatprep.subr.bf16.mxu1 %v3538_v0 }
 0x308   :  { %3265 = vmatpush3.bf16.msra.mxu1 %v3337_v57  ;;  %v3370_v57 = vld [vmem:[%s4332_s10 + $0x24] ss:$16 sps:$4 sm:$0xff]  }
 0x309   :  { %2728 = vmatprep.subr.bf16.mxu1 %v3349_v11  ;;  %v3416_v11 = vld [vmem:[%s4332_s10 + $0x120] ss:$16 sps:$4 sm:$0xff]  }
 0x3a3   :  { %v1242_v58 = vpop.f32.mrf.mxu1  ;;  %v1318_v59 = vpop.f32.mrf.mxu0 }
 0x3a4   :  { %1246 = vst.msk [vmem:[#allocation2] sm:$0xff] %vm55_vm1, %v1242_v58  ;;  %1323 = vrot.lane.b32.xlu1 %v1318_v59, %s3541_s4  ;;  %v3368_v58 = vld [vmem:[%s4332_s10 + $0x20] ss:$16 sps:$4 sm:$0xff]   ;;  %v3376_v59 = vld [vmem:[%s4332_s10 + $0x4] ss:$16 sps:$4 sm:$0xff]  }
 0x3a5   :  { %v3228_v60 = vpop.f32.mrf.mxu1  ;;  %v3235_v61 = vpop.f32.mrf.mxu0 }
 0x3a6   :  { %v3374_v60 = vld [vmem:[%s4332_s10] ss:$16 sps:$4 sm:$0xff]   ;;  %v3382_v61 = vld [vmem:[%s4332_s10 + $0x1e4] ss:$16 sps:$4 sm:$0xff]  }
 0x3a9   :  { %v1399_v62 = vpop.f32.mrf.mxu1  ;;  %v1480_v63 = vpop.f32.mrf.mxu0 }
 0x3aa   :  { %1485 = vrot.lane.b32.xlu1 %v1480_v63, %s3542_s29  ;;  %1404 = vrot.lane.b32.xlu0 %v1399_v62, %s3543_s30  ;;  %v3380_v62 = vld [vmem:[%s4332_s10 + $0x1e0] ss:$16 sps:$4 sm:$0xff]   ;;  %v3388_v63 = vld [vmem:[%s4332_s10 + $0x1c4] ss:$16 sps:$4 sm:$0xff]  }
 0x3ab   :  { %v3242_v1 = vpop.f32.mrf.mxu1  ;;  %v3249_v3 = vpop.f32.mrf.mxu0 }
 0x3ac   :  { %v3386_v1 = vld [vmem:[%s4332_s10 + $0x1c0] ss:$16 sps:$4 sm:$0xff]  }
 0x3ad   :  { %v3392_v3 = vld [vmem:[%s4332_s10 + $0x1a0] ss:$16 sps:$4 sm:$0xff]  }
 0x3ae   :  { %2044 = vperm.xlu1 %3297, %v2041_v2   ;;  %1511 = vperm.xlu0 %3296, %v1508_v4   ;;  %v3394_v2 = vld [vmem:[%s4332_s10 + $0x1a4] ss:$16 sps:$4 sm:$0xff]  }
 0x3af   :  { %v3400_v4 = vld [vmem:[%s4332_s10 + $0x184] ss:$16 sps:$4 sm:$0xff]  }
 0x416   :  { %v1324_v5 = vpop.permute.xlu1 %1323 }
 0x417   :  { %1327 = vst.msk [vmem:[#allocation2] sm:$0xff] %vm1326_vm4, %v1324_v5  ;;  %v3398_v5 = vld [vmem:[%s4332_s10 + $0x180] ss:$16 sps:$4 sm:$0xff]  }
 0x41c   :  { %v1405_v6 = vpop.permute.xlu0 %1404  ;;  %v1486_v7 = vpop.permute.xlu1 %1485 }
 0x41d   :  { %1408 = vst.msk [vmem:[#allocation2] sm:$0xff] %vm1407_vm5, %v1405_v6  ;;  %v3406_v6 = vld [vmem:[%s4332_s10 + $0x164] ss:$16 sps:$4 sm:$0xff]  }
 0x41e   :  { %1489 = vst.msk [vmem:[#allocation2] sm:$0xff] %vm1488_vm6, %v1486_v7  ;;  %v3404_v7 = vld [vmem:[%s4332_s10 + $0x160] ss:$16 sps:$4 sm:$0xff]  }
 0x425   :  { %v1490_v8 = vld [vmem:[#allocation2] sm:$0xff] }
 0x426   :  { %v1491_v9 = vpack.c.bf16 %v1490_v8, %v1490_v8  ;;  %v3412_v8 = vld [vmem:[%s4332_s10 + $0x144] ss:$16 sps:$4 sm:$0xff]  }
 0x428   :  { %3267 = vmatmul.mubr.bf16.vlgmr.msra.gmra.mxu1 %v1491_v9  ;;  %v3410_v9 = vld [vmem:[%s4332_s10 + $0x140] ss:$16 sps:$4 sm:$0xff]  }
 0x429   :  { %2729 = vmatpush1.bf16.msra.mxu1 %v3347_v10  ;;  %v1512_v36 = vpop.permute.xlu0 %1511  ;;  %v3418_v10 = vld [vmem:[%s4332_s10 + $0x124] ss:$16 sps:$4 sm:$0xff]  }
 0x42a   :  { %2730 = vmatprep.subr.bf16.mxu1 %v3355_v13  ;;  %v3425_v13 = vld [vmem:[%s4332_s10 + $0x340] ss:$16 sps:$4 sm:$0xff]  }
 0x42d   :  { %2731 = vmatpush1.bf16.msra.mxu1 %v3353_v12  ;;  %v3424_v12 = vld [vmem:[%s4332_s10 + $0x104] ss:$16 sps:$4 sm:$0xff]  }
 0x42e   :  { %2732 = vmatprep.subr.bf16.mxu1 %v3361_v15  ;;  %v3422_v15 = vld [vmem:[%s4332_s10 + $0x100] ss:$16 sps:$4 sm:$0xff]  }
 0x431   :  { %2733 = vmatpush1.bf16.msra.mxu1 %v3359_v14  ;;  %v3427_v14 = vld [vmem:[%s4332_s10 + $0x344] ss:$16 sps:$4 sm:$0xff]  }
 0x432   :  { %2734 = vmatprep.subr.bf16.mxu1 %v3367_v17  ;;  %v3433_v17 = vld [vmem:[%s4332_s10 + $0xec] ss:$16 sps:$4 sm:$0xff]  }
 0x435   :  { %2735 = vmatpush1.bf16.msra.mxu1 %v3365_v16  ;;  %v3430_v16 = vld [vmem:[%s4332_s10 + $0x324] ss:$16 sps:$4 sm:$0xff]  }
 0x436   :  { %2736 = vmatprep.subr.bf16.mxu1 %v3373_v19  ;;  %v3434_v19 = vld [vmem:[%s4332_s10 + $0x300] ss:$16 sps:$4 sm:$0xff]  }
 0x439   :  { %2737 = vmatpush1.bf16.msra.mxu1 %v3371_v18  ;;  %v3428_v18 = vld [vmem:[%s4332_s10 + $0x320] ss:$16 sps:$4 sm:$0xff]  }
 0x43a   :  { %2738 = vmatprep.subr.bf16.mxu1 %v3379_v21  ;;  %v3445_v21 = vld [vmem:[%s4332_s10 + $0x2ec] ss:$16 sps:$4 sm:$0xff]  }
 0x43d   :  { %2739 = vmatpush1.bf16.msra.mxu1 %v3377_v20  ;;  %v3436_v20 = vld [vmem:[%s4332_s10 + $0x304] ss:$16 sps:$4 sm:$0xff]  }
 0x43e   :  { %2740 = vmatprep.subr.bf16.mxu1 %v3385_v23 }
 0x441   :  { %2741 = vmatpush1.bf16.msra.mxu1 %v3383_v22 }
 0x442   :  { %2742 = vmatprep.subr.bf16.mxu1 %v3391_v25 }
 0x445   :  { %2743 = vmatpush1.bf16.msra.mxu1 %v3389_v24 }
 0x446   :  { %2744 = vmatprep.subr.bf16.mxu1 %v3397_v27 }
 0x449   :  { %2745 = vmatpush2.bf16.msra.mxu1 %v3395_v26  ;;  %v3431_v26 = vld [vmem:[%s4332_s10 + $0xe8] ss:$16 sps:$4 sm:$0xff]  }
 0x44a   :  { %2746 = vmatprep.subr.bf16.mxu1 %v3403_v29  ;;  %v3439_v29 = vld [vmem:[%s4332_s10 + $0xcc] ss:$16 sps:$4 sm:$0xff]  }
 0x44d   :  { %2747 = vmatpush2.bf16.msra.mxu1 %v3401_v28 }
 0x44e   :  { %2748 = vmatprep.subr.bf16.mxu1 %v3409_v31  ;;  %v3437_v31 = vld [vmem:[%s4332_s10 + $0xc8] ss:$16 sps:$4 sm:$0xff]  }
 0x451   :  { %2749 = vmatpush2.bf16.msra.mxu1 %v3407_v30 }
 0x452   :  { %2750 = vmatprep.subr.bf16.mxu1 %v3415_v33  ;;  %v3442_v33 = vld [vmem:[%s4332_s10 + $0xac] ss:$16 sps:$4 sm:$0xff]  }
 0x455   :  { %2751 = vmatpush2.bf16.msra.mxu1 %v3413_v32 }
 0x456   :  { %2752 = vmatprep.subr.bf16.mxu1 %v3421_v35 }
 0x459   :  { %2753 = vmatpush2.bf16.msra.mxu1 %v3419_v34 }
 0x45a   :  { %2754 = vmatprep.subr.bf16.mxu1 %v3427_v14  ;;  %v3500_v14 = vld [vmem:[%s4332_s10 + $0x168] ss:$16 sps:$4 sm:$0xff]  }
 0x45d   :  { %2755 = vmatpush2.bf16.msra.mxu1 %v3425_v13  ;;  %v3505_v13 = vld [vmem:[%s4332_s10 + $0x3ac] ss:$16 sps:$4 sm:$0xff]  }
 0x45e   :  { %2756 = vmatprep.subr.bf16.mxu1 %v3430_v16  ;;  %v3508_v16 = vld [vmem:[%s4332_s10 + $0x14c] ss:$16 sps:$4 sm:$0xff]  }
 0x461   :  { %2757 = vmatpush2.bf16.msra.mxu1 %v3428_v18  ;;  %v3506_v18 = vld [vmem:[%s4332_s10 + $0x148] ss:$16 sps:$4 sm:$0xff]  }
 0x462   :  { %2758 = vmatprep.subr.bf16.mxu1 %v3436_v20  ;;  %v3514_v20 = vld [vmem:[%s4332_s10 + $0x12c] ss:$16 sps:$4 sm:$0xff]  }
 0x465   :  { %2759 = vmatpush2.bf16.msra.mxu1 %v3434_v19  ;;  %v3509_v19 = vld [vmem:[%s4332_s10 + $0x388] ss:$16 sps:$4 sm:$0xff]  }
 0x466   :  { %2810 = vmatprep.subr.bf16.mxu1 %v3445_v21  ;;  %v3517_v21 = vld [vmem:[%s4332_s10 + $0x36c] ss:$16 sps:$4 sm:$0xff]  }
 0x4e8   :  { %v1596_v37 = vpop.f32.mrf.mxu1 }
 0x4e9   :  { %v1597_v38 = vadd.f32 %v1596_v37, %v1512_v36  ;;  %v3440_v36 = vld [vmem:[%s4332_s10 + $0xa8] ss:$16 sps:$4 sm:$0xff]  }
 0x4ea   :  { %v3268_v40 = vpop.f32.mrf.mxu1  ;;  %v3443_v37 = vld [vmem:[%s4332_s10 + $0x2e8] ss:$16 sps:$4 sm:$0xff]  }
 0x4eb   :  { %3271 = vmatpush3.msra.mxu0 %v1597_v38  ;;  %v3448_v40 = vld [vmem:[%s4332_s10 + $0x8c] ss:$16 sps:$4 sm:$0xff]  }
 0x4ec   :  { %v1599_v41 = vpop.f32.mrf.mxu1  ;;  %3273 = vmatmul.mubr.msk.f32.vlgmr.msra.gmra.mxu0 %vm380_vm2, %v1602_v39  ;;  %3275 = vmatprep.subr.mxu0 %v3538_v0 }
 0x4ed   :  { %3276 = vmatpush3.msra.mxu0 %v1597_v38  ;;  %3277 = vmatprep.mubr.msk.f32.mxu0 %vm3539_vm0, %v3538_v0  ;;  %v3451_v41 = vld [vmem:[%s4332_s10 + $0x2cc] ss:$16 sps:$4 sm:$0xff]  }
 0x4ee   :  { %v3269_v43 = vpop.f32.mrf.mxu1  ;;  %3280 = vmatprep.subr.mxu0 %v3538_v0 }
 0x4ef   :  { %v3449_v43 = vld [vmem:[%s4332_s10 + $0x2c8] ss:$16 sps:$4 sm:$0xff]  }
 0x4f0   :  { %3278 = vmatmul.mubr.msk.f32.vlgmr.msra.gmra.mxu0 %vm380_vm2, %v2942_v42  ;;  %v3446_v42 = vld [vmem:[%s4332_s10 + $0x88] ss:$16 sps:$4 sm:$0xff]  }
 0x4f1   :  { %3281 = vmatpush3.msra.mxu0 %v1597_v38  ;;  %3282 = vmatprep.mubr.msk.f32.mxu0 %vm3539_vm0, %v3538_v0 }
 0x4f2   :  { %3285 = vmatprep.subr.mxu0 %v3538_v0 }
 0x4f4   :  { %3283 = vmatmul.mubr.msk.f32.vlgmr.msra.gmra.mxu0 %vm380_vm2, %v2944_v44  ;;  %v3454_v44 = vld [vmem:[%s4332_s10 + $0x6c] ss:$16 sps:$4 sm:$0xff]  }
 0x4f5   :  { %3286 = vmatpush3.msra.mxu0 %v1597_v38  ;;  %3287 = vmatprep.mubr.msk.f32.mxu0 %vm3539_vm0, %v3538_v0  ;;  %v3341_v0 = vld [vmem:[%s4332_s10 + $0xc0] ss:$16 sps:$4 sm:$0xff]  }
 0x4f6   :  { %2687 = vmatprep.subr.bf16.mxu0 %v3340_v45  ;;  %v3457_v45 = vld [vmem:[%s4332_s10 + $0x2ac] ss:$16 sps:$4 sm:$0xff]  }
 0x4f8   :  { %3288 = vmatmul.mubr.msk.f32.vlgmr.msra.gmra.mxu0 %vm380_vm2, %v2946_v46  ;;  %v3452_v46 = vld [vmem:[%s4332_s10 + $0x68] ss:$16 sps:$4 sm:$0xff]  }
 0x4f9   :  { %2688 = vmatpush1.bf16.msra.mxu0 %v3338_v47  ;;  %v3455_v47 = vld [vmem:[%s4332_s10 + $0x2a8] ss:$16 sps:$4 sm:$0xff]  }
 0x4fa   :  { %2689 = vmatprep.subr.bf16.mxu0 %v3343_v48  ;;  %v3460_v48 = vld [vmem:[%s4332_s10 + $0x4c] ss:$16 sps:$4 sm:$0xff]  }
 0x4fd   :  { %2690 = vmatpush1.bf16.msra.mxu0 %v3341_v0  ;;  %v3463_v0 = vld [vmem:[%s4332_s10 + $0x28c] ss:$16 sps:$4 sm:$0xff]  }
 0x4fe   :  { %2691 = vmatprep.subr.bf16.mxu0 %v3346_v49  ;;  %v3458_v49 = vld [vmem:[%s4332_s10 + $0x48] ss:$16 sps:$4 sm:$0xff]  }
 0x501   :  { %2692 = vmatpush1.bf16.msra.mxu0 %v3344_v50  ;;  %v3461_v50 = vld [vmem:[%s4332_s10 + $0x288] ss:$16 sps:$4 sm:$0xff]  }
 0x502   :  { %2693 = vmatprep.subr.bf16.mxu0 %v3352_v51  ;;  %v3466_v51 = vld [vmem:[%s4332_s10 + $0x2c] ss:$16 sps:$4 sm:$0xff]  }
 0x505   :  { %2694 = vmatpush1.bf16.msra.mxu0 %v3350_v52  ;;  %v3469_v52 = vld [vmem:[%s4332_s10 + $0x26c] ss:$16 sps:$4 sm:$0xff]  }
 0x506   :  { %2695 = vmatprep.subr.bf16.mxu0 %v3358_v53  ;;  %v3464_v53 = vld [vmem:[%s4332_s10 + $0x28] ss:$16 sps:$4 sm:$0xff]  }
 0x509   :  { %2696 = vmatpush1.bf16.msra.mxu0 %v3356_v54  ;;  %v3467_v54 = vld [vmem:[%s4332_s10 + $0x268] ss:$16 sps:$4 sm:$0xff]  }
 0x50a   :  { %2697 = vmatprep.subr.bf16.mxu0 %v3364_v55  ;;  %v3472_v55 = vld [vmem:[%s4332_s10 + $0xc] ss:$16 sps:$4 sm:$0xff]  }
 0x50d   :  { %2698 = vmatpush1.bf16.msra.mxu0 %v3362_v56  ;;  %v3475_v56 = vld [vmem:[%s4332_s10 + $0x24c] ss:$16 sps:$4 sm:$0xff]  }
 0x50e   :  { %2699 = vmatprep.subr.bf16.mxu0 %v3370_v57  ;;  %v3470_v57 = vld [vmem:[%s4332_s10 + $0x8] ss:$16 sps:$4 sm:$0xff]  }
 0x511   :  { %2700 = vmatpush1.bf16.msra.mxu0 %v3368_v58  ;;  %v3473_v58 = vld [vmem:[%s4332_s10 + $0x248] ss:$16 sps:$4 sm:$0xff]  }
 0x512   :  { %2701 = vmatprep.subr.bf16.mxu0 %v3376_v59  ;;  %v3478_v59 = vld [vmem:[%s4332_s10 + $0x1ec] ss:$16 sps:$4 sm:$0xff]  }
 0x515   :  { %2702 = vmatpush1.bf16.msra.mxu0 %v3374_v60  ;;  %v3481_v60 = vld [vmem:[%s4332_s10 + $0x22c] ss:$16 sps:$4 sm:$0xff]  }
 0x516   :  { %2703 = vmatprep.subr.bf16.mxu0 %v3382_v61  ;;  %v3476_v61 = vld [vmem:[%s4332_s10 + $0x1e8] ss:$16 sps:$4 sm:$0xff]  }
 0x519   :  { %2704 = vmatpush2.bf16.msra.mxu0 %v3380_v62  ;;  %v3479_v62 = vld [vmem:[%s4332_s10 + $0x228] ss:$16 sps:$4 sm:$0xff]  }
 0x51a   :  { %2705 = vmatprep.subr.bf16.mxu0 %v3388_v63  ;;  %v3484_v63 = vld [vmem:[%s4332_s10 + $0x1cc] ss:$16 sps:$4 sm:$0xff]  }
 0x51d   :  { %2706 = vmatpush2.bf16.msra.mxu0 %v3386_v1  ;;  %v3487_v1 = vld [vmem:[%s4332_s10 + $0x20c] ss:$16 sps:$4 sm:$0xff]  }
 0x51e   :  { %2707 = vmatprep.subr.bf16.mxu0 %v3394_v2  ;;  %v3482_v2 = vld [vmem:[%s4332_s10 + $0x1c8] ss:$16 sps:$4 sm:$0xff]  }
 0x521   :  { %2708 = vmatpush2.bf16.msra.mxu0 %v3392_v3  ;;  %v3485_v3 = vld [vmem:[%s4332_s10 + $0x208] ss:$16 sps:$4 sm:$0xff]  }
 0x522   :  { %2709 = vmatprep.subr.bf16.mxu0 %v3400_v4  ;;  %v3490_v4 = vld [vmem:[%s4332_s10 + $0x1ac] ss:$16 sps:$4 sm:$0xff]  }
 0x525   :  { %2710 = vmatpush2.bf16.msra.mxu0 %v3398_v5  ;;  %v3493_v5 = vld [vmem:[%s4332_s10 + $0x3ec] ss:$16 sps:$4 sm:$0xff]  }
 0x526   :  { %2711 = vmatprep.subr.bf16.mxu0 %v3406_v6  ;;  %v3488_v6 = vld [vmem:[%s4332_s10 + $0x1a8] ss:$16 sps:$4 sm:$0xff]  }
 0x529   :  { %2712 = vmatpush2.bf16.msra.mxu0 %v3404_v7  ;;  %v3491_v7 = vld [vmem:[%s4332_s10 + $0x3e8] ss:$16 sps:$4 sm:$0xff]  }
 0x52a   :  { %2713 = vmatprep.subr.bf16.mxu0 %v3412_v8  ;;  %v3496_v8 = vld [vmem:[%s4332_s10 + $0x18c] ss:$16 sps:$4 sm:$0xff]  }
 0x52d   :  { %2714 = vmatpush2.bf16.msra.mxu0 %v3410_v9  ;;  %v3499_v9 = vld [vmem:[%s4332_s10 + $0x3cc] ss:$16 sps:$4 sm:$0xff]  }
 0x52e   :  { %2715 = vmatprep.subr.bf16.mxu0 %v3418_v10  ;;  %v3494_v10 = vld [vmem:[%s4332_s10 + $0x188] ss:$16 sps:$4 sm:$0xff]  }
 0x531   :  { %2716 = vmatpush2.bf16.msra.mxu0 %v3416_v11  ;;  %v3497_v11 = vld [vmem:[%s4332_s10 + $0x3c8] ss:$16 sps:$4 sm:$0xff]  }
 0x532   :  { %2717 = vmatprep.subr.bf16.mxu0 %v3424_v12  ;;  %v3502_v12 = vld [vmem:[%s4332_s10 + $0x16c] ss:$16 sps:$4 sm:$0xff]  }
 0x535   :  { %2718 = vmatpush2.bf16.msra.mxu0 %v3422_v15  ;;  %v3503_v15 = vld [vmem:[%s4332_s10 + $0x3a8] ss:$16 sps:$4 sm:$0xff]  }
 0x536   :  { %2769 = vmatprep.subr.bf16.mxu0 %v3433_v17  ;;  %v3511_v17 = vld [vmem:[%s4332_s10 + $0x38c] ss:$16 sps:$4 sm:$0xff]  }
 0x5ac   :  { %v1672_v22 = vpop.f32.mrf.mxu0 }
 0x5ad   :  { %v4118_v27 = vpack.c.bf16 %v1672_v22, %v1672_v22  ;;  %v3512_v22 = vld [vmem:[%s4332_s10 + $0x128] ss:$16 sps:$4 sm:$0xff]  }
 0x5ae   :  { %v3274_v23 = vpop.f32.mrf.mxu0 }
 0x5af   :  { %v3515_v23 = vld [vmem:[%s4332_s10 + $0x368] ss:$16 sps:$4 sm:$0xff]  }
 0x5b0   :  { %v1748_v24 = vpop.f32.mrf.mxu0 }
 0x5b1   :  { %v1910_v25 = vpack.c.bf16 %v1748_v24, %v1748_v24  ;;  %v3520_v24 = vld [vmem:[%s4332_s10 + $0x10c] ss:$16 sps:$4 sm:$0xff]  }
 0x5b2   :  { %v3279_v28 = vpop.f32.mrf.mxu0 }
 0x5b3   :  { %2719 = vmatprep.mubr.bf16.mxu0 %v1910_v25  ;;  %v3521_v28 = vld [vmem:[%s4332_s10 + $0x348] ss:$16 sps:$4 sm:$0xff]  }
 0x5b4   :  { %v1824_v30 = vpop.f32.mrf.mxu0  ;;  %2720 = vmatmul.mubr.bf16.vlgmr.msra.gmra.mxu0 %v4118_v27 }
 0x5b5   :  { %2770 = vmatpush1.bf16.msra.mxu0 %v3431_v26  ;;  %2801 = vmatprep.mubr.bf16.mxu0 %v1910_v25  ;;  %v4136_v38 = vpack.c.bf16 %v1824_v30, %v1824_v30  ;;  %v3523_v25 = vld [vmem:[%s4332_s10 + $0x34c] ss:$16 sps:$4 sm:$0xff]   ;;  %v3518_v26 = vld [vmem:[%s4332_s10 + $0x108] ss:$16 sps:$4 sm:$0xff]  }
 0x5b6   :  { %v3284_v32 = vpop.f32.mrf.mxu0  ;;  %2771 = vmatprep.subr.bf16.mxu0 %v3439_v29  ;;  %v3526_v29 = vld [vmem:[%s4332_s10 + $0x32c] ss:$16 sps:$4 sm:$0xff]   ;;  %v3524_v30 = vld [vmem:[%s4332_s10 + $0x328] ss:$16 sps:$4 sm:$0xff]  }
 0x5b7   :  { %v3527_v32 = vld [vmem:[%s4332_s10 + $0x308] ss:$16 sps:$4 sm:$0xff]  }
 0x5b8   :  { %v1900_v34 = vpop.f32.mrf.mxu0 }
 0x5b9   :  { %v1912_v35 = vpack.c.bf16 %v1900_v34, %v1900_v34  ;;  %2772 = vmatpush1.bf16.msra.mxu0 %v3437_v31  ;;  %v3529_v31 = vld [vmem:[%s4332_s10 + $0x30c] ss:$16 sps:$4 sm:$0xff]  }
 0x5ba   :  { %2773 = vmatprep.subr.bf16.mxu0 %v3442_v33  ;;  %v3289_v39 = vpop.f32.mrf.mxu0 }
 0x5bb   :  { %2760 = vmatprep.mubr.bf16.mxu1 %v1912_v35 }
 0x5bc   :  { %2761 = vmatmul.mubr.bf16.vlgmr.msra.gmra.mxu1 %v4136_v38 }
 0x5bd   :  { %2774 = vmatpush1.bf16.msra.mxu0 %v3440_v36  ;;  %2811 = vmatpush1.bf16.msra.mxu1 %v3443_v37  ;;  %v2045_v36 = vpop.permute.xlu1 %2044 }
 0x5be   :  { %2775 = vmatprep.subr.bf16.mxu0 %v3448_v40  ;;  %2812 = vmatprep.subr.bf16.mxu1 %v3451_v41 }
 0x5bf   :  { %2842 = vmatprep.mubr.bf16.mxu1 %v1912_v35 }
 0x5c1   :  { %2776 = vmatpush1.bf16.msra.mxu0 %v3446_v42  ;;  %2813 = vmatpush1.bf16.msra.mxu1 %v3449_v43 }
 0x5c2   :  { %2777 = vmatprep.subr.bf16.mxu0 %v3454_v44  ;;  %2814 = vmatprep.subr.bf16.mxu1 %v3457_v45 }
 0x5c5   :  { %2778 = vmatpush1.bf16.msra.mxu0 %v3452_v46  ;;  %2815 = vmatpush1.bf16.msra.mxu1 %v3455_v47 }
 0x5c6   :  { %2779 = vmatprep.subr.bf16.mxu0 %v3460_v48  ;;  %2816 = vmatprep.subr.bf16.mxu1 %v3463_v0 }
 0x5c9   :  { %2780 = vmatpush1.bf16.msra.mxu0 %v3458_v49  ;;  %2817 = vmatpush1.bf16.msra.mxu1 %v3461_v50 }
 0x5ca   :  { %2781 = vmatprep.subr.bf16.mxu0 %v3466_v51  ;;  %2818 = vmatprep.subr.bf16.mxu1 %v3469_v52 }
 0x5cd   :  { %2782 = vmatpush1.bf16.msra.mxu0 %v3464_v53  ;;  %2819 = vmatpush1.bf16.msra.mxu1 %v3467_v54 }
 0x5ce   :  { %2783 = vmatprep.subr.bf16.mxu0 %v3472_v55  ;;  %2820 = vmatprep.subr.bf16.mxu1 %v3475_v56 }
 0x5d1   :  { %2784 = vmatpush1.bf16.msra.mxu0 %v3470_v57  ;;  %2821 = vmatpush1.bf16.msra.mxu1 %v3473_v58 }
 0x5d2   :  { %2785 = vmatprep.subr.bf16.mxu0 %v3478_v59  ;;  %2822 = vmatprep.subr.bf16.mxu1 %v3481_v60 }
 0x5d5   :  { %2786 = vmatpush2.bf16.msra.mxu0 %v3476_v61  ;;  %2823 = vmatpush1.bf16.msra.mxu1 %v3479_v62 }
 0x5d6   :  { %2787 = vmatprep.subr.bf16.mxu0 %v3484_v63  ;;  %2824 = vmatprep.subr.bf16.mxu1 %v3487_v1 }
 0x5d9   :  { %2788 = vmatpush2.bf16.msra.mxu0 %v3482_v2  ;;  %2825 = vmatpush1.bf16.msra.mxu1 %v3485_v3 }
 0x5da   :  { %2789 = vmatprep.subr.bf16.mxu0 %v3490_v4  ;;  %2826 = vmatprep.subr.bf16.mxu1 %v3493_v5 }
 0x5dd   :  { %2790 = vmatpush2.bf16.msra.mxu0 %v3488_v6  ;;  %2827 = vmatpush2.bf16.msra.mxu1 %v3491_v7 }
 0x5de   :  { %2791 = vmatprep.subr.bf16.mxu0 %v3496_v8  ;;  %2828 = vmatprep.subr.bf16.mxu1 %v3499_v9 }
 0x5e1   :  { %2792 = vmatpush2.bf16.msra.mxu0 %v3494_v10  ;;  %2829 = vmatpush2.bf16.msra.mxu1 %v3497_v11 }
 0x5e2   :  { %2793 = vmatprep.subr.bf16.mxu0 %v3502_v12  ;;  %2830 = vmatprep.subr.bf16.mxu1 %v3505_v13 }
 0x5e5   :  { %2794 = vmatpush2.bf16.msra.mxu0 %v3500_v14  ;;  %2831 = vmatpush2.bf16.msra.mxu1 %v3503_v15 }
 0x5e6   :  { %2795 = vmatprep.subr.bf16.mxu0 %v3508_v16  ;;  %2832 = vmatprep.subr.bf16.mxu1 %v3511_v17 }
 0x5e9   :  { %2796 = vmatpush2.bf16.msra.mxu0 %v3506_v18  ;;  %2833 = vmatpush2.bf16.msra.mxu1 %v3509_v19 }
 0x5ea   :  { %2797 = vmatprep.subr.bf16.mxu0 %v3514_v20  ;;  %2834 = vmatprep.subr.bf16.mxu1 %v3517_v21 }
 0x5ed   :  { %2798 = vmatpush2.bf16.msra.mxu0 %v3512_v22  ;;  %2835 = vmatpush2.bf16.msra.mxu1 %v3515_v23 }
 0x5ee   :  { %2799 = vmatprep.subr.bf16.mxu0 %v3520_v24  ;;  %2836 = vmatprep.subr.bf16.mxu1 %v3523_v25 }
 0x5f1   :  { %2800 = vmatpush2.bf16.msra.mxu0 %v3518_v26  ;;  %2837 = vmatpush2.bf16.msra.mxu1 %v3521_v28 }
 0x5f2   :  { %2838 = vmatprep.subr.bf16.mxu1 %v3526_v29 }
 0x5f4   :  { %2802 = vmatmul.mubr.bf16.vlgmr.msra.gmra.mxu0 %v4118_v27 }
 0x5f5   :  { %2839 = vmatpush2.bf16.msra.mxu1 %v3524_v30 }
 0x5f6   :  { %2840 = vmatprep.subr.bf16.mxu1 %v3529_v31 }
 0x5f9   :  { %2841 = vmatpush2.bf16.msra.mxu1 %v3527_v32 }
 0x5fc   :  { %2843 = vmatmul.mubr.bf16.vlgmr.msra.gmra.mxu1 %v4136_v38 }
 0x674   :  { %v2721_v33 = vpop.f32.mrf.mxu0 }
 0x675   :  { %v2722_v39 = vadd.f32 %v2721_v33, %v2045_v36 }
 0x676   :  { %v2723_v34 = vpop.f32.mrf.mxu0 }
 0x677   :  { %v2724_v41 = vadd.f32 %v2723_v34, %v2045_v36 }
 0x678   :  { %v2725_v35 = vpop.f32.mrf.mxu0 }
 0x67a   :  { %v2726_v37 = vpop.f32.mrf.mxu0 }
 0x67c   :  { %v2762_v40 = vpop.f32.mrf.mxu1 }
 0x67d   :  { %v2763_v42 = vadd.f32 %v2762_v40, %v2722_v39 }
 0x67e   :  { %v2764_v43 = vpop.f32.mrf.mxu1 }
 0x67f   :  { %3530 = vtanh.f32 %v2763_v42  ;;  %v2765_v27 = vadd.f32 %v2764_v43, %v2724_v41 }
 0x680   :  { %v2766_v44 = vpop.f32.mrf.mxu1 }
 0x681   :  { %3532 = vtanh.f32 %v2765_v27 }
 0x682   :  { %v2767_v45 = vpop.f32.mrf.mxu1 }
 0x68c   :  { %v3531_v46 = vpop.eup %3530 }
 0x68d   :  { %2855 = vst [vmem:[%s4334_s13] sm:$0xff] %v3531_v46 }
 0x68e   :  { %v3533_v38 = vpop.eup %3532 }
 0x68f   :  { %2856 = vst [vmem:[%s4334_s13 + $0x8] sm:$0xff] %v3533_v38 }
 0x6b4   :  { %v2803_v47 = vpop.f32.mrf.mxu0 }
 0x6b5   :  { %v2804_v50 = vadd.f32 %v2803_v47, %v2045_v36 }
 0x6b6   :  { %v2805_v48 = vpop.f32.mrf.mxu0 }
 0x6b7   :  { %v2806_v52 = vadd.f32 %v2805_v48, %v2045_v36 }
 0x6b8   :  { %v2807_v0 = vpop.f32.mrf.mxu0 }
 0x6ba   :  { %v2808_v49 = vpop.f32.mrf.mxu0 }
 0x6bc   :  { %v2844_v51 = vpop.f32.mrf.mxu1 }
 0x6bd   :  { %v2845_v53 = vadd.f32 %v2844_v51, %v2804_v50 }
 0x6be   :  { %v2846_v54 = vpop.f32.mrf.mxu1 }
 0x6bf   :  { %3534 = vtanh.f32 %v2845_v53  ;;  %v2847_v55 = vadd.f32 %v2846_v54, %v2806_v52 }
 0x6c0   :  { %v2848_v56 = vpop.f32.mrf.mxu1 }
 0x6c1   :  { %3536 = vtanh.f32 %v2847_v55 }
 0x6c2   :  { %v2849_v57 = vpop.f32.mrf.mxu1 }
 0x6cc   :  { %v3535_v58 = vpop.eup %3534 }
 0x6cd   :  { %2857 = vst [vmem:[%s4334_s13 + $0x10] sm:$0xff] %v3535_v58 }
 0x6ce   :  { %v3537_v59 = vpop.eup %3536 }
 0x6cf   :  { %2858 = vst [vmem:[%s4334_s13 + $0x18] sm:$0xff] %v3537_v59 }

</bundles_post_ra>
